<compile_context>
chip_gen: v6e
topology: v6e:2x2x1
jax: 0.10.0
libtpu: 0.0.40
codegen_flags: <defaults>
</compile_context>

<pallas_src>
import functools

import jax
import jax.numpy as jnp
from jax.experimental import pallas as pl
from jax.experimental.pallas import tpu as pltpu


def _round_up(x, m):
    return ((x + m - 1) // m) * m


def _cdiv(a, b):
    return -(-a // b)


# ----------------------------------------------------------------------------
# Pallas kernel: fused batched gather + reduce-and-place of all nine losses
# ----------------------------------------------------------------------------
def _reasone_kernel(e1_ref, eh_ref, et_ref, uc_ref, bc_ref,
                    etab_ref, epair_ref, utab_ref, btab_ref, sel_ref,
                    out_ref, *, margin, embed_dim):
    f32 = jnp.float32
    D = embed_dim
    T = out_ref.shape[0]          # rows per grid step

    etab = etab_ref[...]          # (Ce, D)    entity table
    epair = epair_ref[...]        # (2Ce, 2D)  block-diag [[E,0],[0,E]]
    utab = utab_ref[...]          # (Cu, D)    unary-concept table
    btab = btab_ref[...]          # (Cb, 2D)   binary-concept [H | T] table
    Ce, Cu, Cb = etab.shape[0], utab.shape[0], btab.shape[0]

    def onehot(idx_col, width):
        # idx_col: (M, 1) int32 -> (M, width) f32 one-hot (one iota per gather group).
        io = jax.lax.broadcasted_iota(jnp.int32, (idx_col.shape[0], width), 1)
        return (io == idx_col).astype(f32)

    # ---- batched gathers: one MXU matmul per table --------------------------------
    # entity singles: [aUE ; nAUE ; uniqE]
    ge1 = jnp.dot(onehot(e1_ref[...], Ce), etab, preferred_element_type=f32)   # (3T, D)
    aUEE, nAUEE, uniqEE = ge1[:T], ge1[T:2 * T], ge1[2 * T:]

    # entity H/T pairs through block-diag table -> lane-fused [E[h] | E[t]]
    iop = jax.lax.broadcasted_iota(jnp.int32, (2 * T, 2 * Ce), 1)
    oh_pair = jnp.logical_or(iop == eh_ref[...],
                             iop == et_ref[...] + Ce).astype(f32)
    gep = jnp.dot(oh_pair, epair, preferred_element_type=f32)                  # (2T, 2D)
    aBpE, nABpE = gep[:T], gep[T:]

    # unary concepts: [aUC ; nAUC ; uniqUC]
    gu = jnp.dot(onehot(uc_ref[...], Cu), utab, preferred_element_type=f32)    # (3T, D)
    aUCE, nAUCE, uniqUCE = gu[:T], gu[T:2 * T], gu[2 * T:]

    # binary concepts (H|T fused): [aBC ; nABC ; uniqBC]
    gb = jnp.dot(onehot(bc_ref[...], Cb), btab, preferred_element_type=f32)    # (3T, 2D)
    aBfull, nABfull, uBfull = gb[:T], gb[T:2 * T], gb[2 * T:]

    one = f32(1.0)

    # ---- elementwise terms (BC terms stay fused at 2D lane width) ------------------
    tu = (one - aUCE) * aUEE            # (T, D)
    tb = (one - aBfull) * aBpE          # (T, 2D): [tmpBE2CH | tmpBE2CT]
    tnu = (one - nAUCE) * nAUEE         # (T, D)
    tnb = (one - nABfull) * nABpE       # (T, 2D)
    tuc = uniqUCE * (one - uniqUCE)     # (T, D)
    tbc = uBfull * (one - uBfull)       # (T, 2D)

    # ---- reduce-and-place on the MXU: packed[:, j] = rowsum(x_j) -------------------
    def place(x, j):
        k = x.shape[1]
        s = sel_ref[j][:k, :]           # (k, 128) static selection (ones in target lane)
        return jnp.dot(x, s, preferred_element_type=f32)

    packed = place(tu * tu, 0)                        # lane 0: uE2CMemberL
    packed = packed + place(tb * tb, 1)               # lane 1: bE2CMemberL (H+T summed)
    packed = packed + place(tnu * tnu, 2)             # lane 2: pre-hinge disc (unary)
    packed = packed + place(tnb * tnb, 3)             # lane 3: pre-hinge disc (binary)
    packed = packed + place(uniqEE * uniqEE, 4)       # lane 4: |E|^2 (pre (s-1)^2)
    packed = packed + place(tuc * tuc, 5)             # lane 5: uniqUCBasisAlignL
    packed = packed + place(tbc * tbc, 6)             # lane 6: uniqBCBasisAlignL
    packed = packed + place(jnp.abs(uniqUCE), 7)      # lane 7: pre-hinge |UC| sum
    packed = packed + place(jnp.abs(uBfull), 8)       # lanes 8/9: |BCH|, |BCT| sums

    # ---- lane-masked post-ops (hinges and (s-1)^2) ----------------------------------
    lane = jax.lax.broadcasted_iota(jnp.int32, (T, 128), 1)
    hinge_m = jnp.logical_or(lane == 2, lane == 3)               # max(margin - s, 0)
    hinge_1 = jnp.logical_and(lane >= 7, lane <= 9)              # max(1 - s, 0)
    hinge = jnp.logical_or(hinge_m, hinge_1)
    cvec = jnp.where(hinge_m, f32(margin), one)
    hinged = jnp.maximum(cvec - packed, f32(0.0))
    res = jnp.where(hinge, hinged, packed)
    sm1 = packed - one
    res = jnp.where(lane == 4, sm1 * sm1, res)                   # uniqENormL
    out_ref[...] = res            # single unmasked full-width (tile, 128) store


def _reasone_losses_pallas(idx_groups, etab, epair, utab, btab, sel,
                           margin, embed_dim, tile, steps):
    """idx_groups: 5 int32 arrays of shape (steps*G*tile, 1). Returns (steps*tile, 128)."""
    idx_e1, idx_eh, idx_et, idx_u, idx_b = idx_groups
    n_pad = steps * tile
    kern = functools.partial(_reasone_kernel, margin=margin, embed_dim=embed_dim)

    def rows_spec(g):
        return pl.BlockSpec((g * tile, 1), lambda i: (i, 0))

    def const_spec(arr):
        nd = arr.ndim
        return pl.BlockSpec(arr.shape, lambda i, _nd=nd: (0,) * _nd)

    # Explicit VMEM budget: tables (double-buffered by the pipeline) + per-step blocks.
    table_bytes = 4 * (etab.size + epair.size + utab.size + btab.size + sel.size)
    idx_bytes = 13 * tile * 128 * 4          # (G*tile, 1) int32 blocks are lane-padded
    out_bytes = tile * 128 * 4
    vmem_limit = int(min(48 << 20,
                         max(32 << 20,
                             2 * (table_bytes + idx_bytes + out_bytes) + (16 << 20))))

    return pl.pallas_call(
        kern,
        out_shape=jax.ShapeDtypeStruct((n_pad, 128), jnp.float32),
        grid=(steps,),
        in_specs=[rows_spec(3), rows_spec(2), rows_spec(2), rows_spec(3), rows_spec(3),
                  const_spec(etab), const_spec(epair), const_spec(utab),
                  const_spec(btab), const_spec(sel)],
        out_specs=pl.BlockSpec((tile, 128), lambda i: (i, 0)),
        compiler_params=pltpu.CompilerParams(
            dimension_semantics=("parallel",),
            vmem_limit_bytes=vmem_limit),
    )(idx_e1, idx_eh, idx_et, idx_u, idx_b, etab, epair, utab, btab, sel)


# ----------------------------------------------------------------------------
# Model: deterministic parameter init + forward (index grouping in JAX glue,
# gathers + math + reduce fused in the Pallas kernel)
# ----------------------------------------------------------------------------
class ReasonEModelPallas:
    ROW_TILE = 512       # max rows per grid step
    MIN_GRID_STEPS = 2   # >= 2 steps so v7x's two TensorCores both get work

    def __init__(self, entityCount, uConceptCount, bConceptCount, embedDim, key):
        self.embedDim = embedDim
        self.entityCount = entityCount
        self.uConceptCount = uConceptCount
        self.bConceptCount = bConceptCount
        self.baseMat = jnp.eye(embedDim, dtype=jnp.float32)

        k1, k2, k3, k4 = jax.random.split(key, 4)

        def xavier_uniform(k, rows, cols):
            bound = (6.0 / (rows + cols)) ** 0.5
            return jax.random.uniform(
                k, (rows, cols), jnp.float32, minval=-bound, maxval=bound)

        def l2norm(w):
            n = jnp.sqrt(jnp.sum(w * w, axis=1, keepdims=True))
            return w / jnp.maximum(n, 1e-12)

        self.entityEmbed = l2norm(xavier_uniform(k1, entityCount, embedDim))
        # uConceptEmbed uses default N(0,1) init in the torch code, then L2-norm.
        self.uConceptEmbed = l2norm(
            jax.random.normal(k2, (uConceptCount, embedDim), jnp.float32))
        self.bConceptHEmbed = l2norm(xavier_uniform(k3, bConceptCount, embedDim))
        self.bConceptTEmbed = l2norm(xavier_uniform(k4, bConceptCount, embedDim))

        # Kernel-side tables: rows padded to a multiple of 128 (lane-aligned one-hots);
        # bConcept H|T concatenated; block-diag entity-pair table for fused H|T gathers.
        def pad_rows(t, mult=128):
            rp = _round_up(t.shape[0], mult)
            return jnp.pad(t, ((0, rp - t.shape[0]), (0, 0)))

        self._etab = pad_rows(self.entityEmbed)
        self._utab = pad_rows(self.uConceptEmbed)
        self._btab = pad_rows(
            jnp.concatenate([self.bConceptHEmbed, self.bConceptTEmbed], axis=1))
        Ce = self._etab.shape[0]
        epair = jnp.zeros((2 * Ce, 2 * embedDim), jnp.float32)
        epair = epair.at[:Ce, :embedDim].set(self._etab)
        epair = epair.at[Ce:, embedDim:].set(self._etab)
        self._epair = epair

        # Static reduce-and-place selection slab: entry j maps a (K,128) matmul into
        # lane j (entry 8 splits H-rows -> lane 8, T-rows -> lane 9).
        lane = jnp.arange(128)[None, :]
        row = jnp.arange(2 * embedDim)[:, None]
        sels = [jnp.broadcast_to((lane == j).astype(jnp.float32),
                                 (2 * embedDim, 128)) for j in range(8)]
        sels.append(jnp.where(row < embedDim, lane == 8, lane == 9).astype(jnp.float32))
        self._sel = jnp.stack(sels, axis=0)        # (9, 2D, 128)

    def forward(self, aUE, aUC, nAUE, nAUC, aBHE, aBTE, aBC,
                nABHE, nABTE, nABC, uniqE, uniqUC, uniqBC, lossMargin):
        nU_pos = aUE.shape[0]
        nU_neg = nAUE.shape[0]
        nB_pos = aBHE.shape[0]
        nB_neg = nABHE.shape[0]
        nE = uniqE.shape[0]
        nUC = uniqUC.shape[0]
        nBC = uniqBC.shape[0]
        n_max = max(nU_pos, nU_neg, nB_pos, nB_neg, nE, nUC, nBC)

        # Tiling: always >= 2 (even) grid steps; 8-row-aligned tiles up to ROW_TILE.
        tile = min(self.ROW_TILE, _round_up(max(n_max, 1), 8))
        steps = max(self.MIN_GRID_STEPS, _cdiv(n_max, tile))
        if steps % 2:
            steps += 1
        tile = _round_up(_cdiv(max(n_max, 1), steps), 8)
        n_pad = steps * tile

        def pad(v):
            v = jnp.asarray(v, jnp.int32)
            return jnp.pad(v, (0, n_pad - v.shape[0]))

        def group(cols):
            # Stack the per-loss index vectors so every grid step sees its G per-loss
            # tiles contiguously: result shape (steps * G * tile, 1).
            g = jnp.stack([pad(c) for c in cols], axis=0)        # (G, n_pad)
            g = g.reshape(len(cols), steps, tile)
            g = jnp.transpose(g, (1, 0, 2)).reshape(-1, 1)
            return g

        idx_e1 = group([aUE, nAUE, uniqE])      # entity singles
        idx_eh = group([aBHE, nABHE])           # entity-pair heads
        idx_et = group([aBTE, nABTE])           # entity-pair tails
        idx_u = group([aUC, nAUC, uniqUC])      # unary concepts
        idx_b = group([aBC, nABC, uniqBC])      # binary concepts

        out = _reasone_losses_pallas(
            (idx_e1, idx_eh, idx_et, idx_u, idx_b),
            self._etab, self._epair, self._utab, self._btab, self._sel,
            float(lossMargin), self.embedDim, tile, steps)

        # Unpack the lane-dense slab: loss j is lane j, sliced to its true row count.
        return (out[:nU_pos, 0],                      # uE2CMemberL
                out[:nB_pos, 1],                      # bE2CMemberL
                out[:nU_neg, 2],                      # uE2CDiscMemberL
                out[:nB_neg, 3],                      # bE2CDiscMemberL
                out[:nE, 4],                          # uniqENormL
                out[:nUC, 5],                         # uniqUCBasisAlignL
                out[:nBC, 6],                         # uniqBCBasisAlignL
                out[:nUC, 7],                         # uniqUCBasisCountL
                out[:nBC, 8] + out[:nBC, 9])          # uniqBCBasisCountL (H + T hinges)


# ----------------------------------------------------------------------------
# Pure-JAX reference (for correctness check only)
# ----------------------------------------------------------------------------
def _reference(model, aUE, aUC, nAUE, nAUC, aBHE, aBTE, aBC,
               nABHE, nABTE, nABC, uniqE, uniqUC, uniqBC, lossMargin):
    E, U, BH, BT = (model.entityEmbed, model.uConceptEmbed,
                    model.bConceptHEmbed, model.bConceptTEmbed)
    one, zero, margin = 1.0, 0.0, lossMargin
    t = (one - U[aUC]) * E[aUE]
    uE2CMemberL = jnp.sum(t * t, axis=1)
    th = (one - BH[aBC]) * E[aBHE]
    tt = (one - BT[aBC]) * E[aBTE]
    bE2CMemberL = jnp.sum(th * th, axis=1) + jnp.sum(tt * tt, axis=1)
    tn = (one - U[nAUC]) * E[nAUE]
    uE2CDiscMemberL = jnp.maximum(margin - jnp.sum(tn * tn, axis=1), zero)
    tnh = (one - BH[nABC]) * E[nABHE]
    tnt = (one - BT[nABC]) * E[nABTE]
    bE2CDiscMemberL = jnp.maximum(
        margin - (jnp.sum(tnh * tnh, axis=1) + jnp.sum(tnt * tnt, axis=1)), zero)
    tmpE = jnp.sum(E[uniqE] * E[uniqE], axis=1) - one
    uniqENormL = tmpE * tmpE
    tuc = U[uniqUC] * (one - U[uniqUC])
    uniqUCBasisAlignL = jnp.sum(tuc * tuc, axis=1)
    uniqUCBasisCountL = jnp.maximum(one - jnp.sum(jnp.abs(U[uniqUC]), axis=1), zero)
    tbch = BH[uniqBC] * (one - BH[uniqBC])
    tbct = BT[uniqBC] * (one - BT[uniqBC])
    uniqBCBasisAlignL = jnp.sum(tbch * tbch, axis=1) + jnp.sum(tbct * tbct, axis=1)
    uniqBCBasisCountL = (
        jnp.maximum(one - jnp.sum(jnp.abs(BH[uniqBC]), axis=1), zero)
        + jnp.maximum(one - jnp.sum(jnp.abs(BT[uniqBC]), axis=1), zero))
    return (uE2CMemberL, bE2CMemberL, uE2CDiscMemberL, bE2CDiscMemberL,
            uniqENormL, uniqUCBasisAlignL, uniqBCBasisAlignL,
            uniqUCBasisCountL, uniqBCBasisCountL)


if __name__ == "__main__":
    key = jax.random.PRNGKey(0)
    kparam, *kidx = jax.random.split(key, 14)

    entityCount, uConceptCount, bConceptCount, embedDim = 20, 6, 6, 32
    N = 8  # batch of triples / indices per loss group
    lossMargin = 1.0

    model = ReasonEModelPallas(entityCount, uConceptCount, bConceptCount,
                               embedDim, kparam)

    def ridx(k, n, hi):
        return jax.random.randint(k, (n,), 0, hi, dtype=jnp.int32)

    aUE = ridx(kidx[0], N, entityCount)
    aUC = ridx(kidx[1], N, uConceptCount)
    nAUE = ridx(kidx[2], N, entityCount)
    nAUC = ridx(kidx[3], N, uConceptCount)
    aBHE = ridx(kidx[4], N, entityCount)
    aBTE = ridx(kidx[5], N, entityCount)
    aBC = ridx(kidx[6], N, bConceptCount)
    nABHE = ridx(kidx[7], N, entityCount)
    nABTE = ridx(kidx[8], N, entityCount)
    nABC = ridx(kidx[9], N, bConceptCount)
    uniqE = ridx(kidx[10], N, entityCount)
    uniqUC = ridx(kidx[11], N, uConceptCount)
    uniqBC = ridx(kidx[12], N, bConceptCount)

    args = (aUE, aUC, nAUE, nAUC, aBHE, aBTE, aBC,
            nABHE, nABTE, nABC, uniqE, uniqUC, uniqBC, lossMargin)

    outs = model.forward(*args)
    outs = jax.block_until_ready(outs)

    refs = _reference(model, *args)
    for o, r in zip(outs, refs):
        assert o.shape == r.shape, (o.shape, r.shape)
        assert jnp.allclose(o, r, atol=1e-5, rtol=1e-4), (o, r)

    print("KERNEL_OK")
</pallas_src>

<mosaic_0001>
module attributes {stable_mosaic.version = 11 : i64} {
  func.func @_reasone_kernel(%arg0: i32, %arg1: memref<24x1xi32, #tpu.memory_space<vmem>>, %arg2: memref<16x1xi32, #tpu.memory_space<vmem>>, %arg3: memref<16x1xi32, #tpu.memory_space<vmem>>, %arg4: memref<24x1xi32, #tpu.memory_space<vmem>>, %arg5: memref<24x1xi32, #tpu.memory_space<vmem>>, %arg6: memref<128x32xf32, #tpu.memory_space<vmem>>, %arg7: memref<256x64xf32, #tpu.memory_space<vmem>>, %arg8: memref<128x32xf32, #tpu.memory_space<vmem>>, %arg9: memref<128x64xf32, #tpu.memory_space<vmem>>, %arg10: memref<9x64x128xf32, #tpu.memory_space<vmem>>, %arg11: memref<8x128xf32, #tpu.memory_space<vmem>>) attributes {dimension_semantics = [#tpu.dimension_semantics<parallel>], iteration_bounds = array<i64: 2>, scalar_prefetch = 0 : i64, scratch_operands = 0 : i64, tpu.core_type = #tpu.core_type<tc>, window_params = [{transform_indices = @transform_0, window_bounds = array<i64: 24, 1>}, {transform_indices = @transform_1, window_bounds = array<i64: 16, 1>}, {transform_indices = @transform_2, window_bounds = array<i64: 16, 1>}, {transform_indices = @transform_3, window_bounds = array<i64: 24, 1>}, {transform_indices = @transform_4, window_bounds = array<i64: 24, 1>}, {pipeline_mode = #tpu.pipeline_mode<synchronous>, transform_indices = @transform_5, window_bounds = array<i64: 128, 32>}, {pipeline_mode = #tpu.pipeline_mode<synchronous>, transform_indices = @transform_6, window_bounds = array<i64: 256, 64>}, {pipeline_mode = #tpu.pipeline_mode<synchronous>, transform_indices = @transform_7, window_bounds = array<i64: 128, 32>}, {pipeline_mode = #tpu.pipeline_mode<synchronous>, transform_indices = @transform_8, window_bounds = array<i64: 128, 64>}, {pipeline_mode = #tpu.pipeline_mode<synchronous>, transform_indices = @transform_9, window_bounds = array<i64: 9, 64, 128>}, {transform_indices = @transform_10, window_bounds = array<i64: 8, 128>}]} {
    %c0 = arith.constant 0 : index
    %c0_0 = arith.constant 0 : index
    %0 = vector.load %arg6[%c0, %c0_0] : memref<128x32xf32, #tpu.memory_space<vmem>>, vector<128x32xf32>
    %c0_1 = arith.constant 0 : index
    %c0_2 = arith.constant 0 : index
    %1 = vector.load %arg7[%c0_1, %c0_2] : memref<256x64xf32, #tpu.memory_space<vmem>>, vector<256x64xf32>
    %c0_3 = arith.constant 0 : index
    %c0_4 = arith.constant 0 : index
    %2 = vector.load %arg8[%c0_3, %c0_4] : memref<128x32xf32, #tpu.memory_space<vmem>>, vector<128x32xf32>
    %c0_5 = arith.constant 0 : index
    %c0_6 = arith.constant 0 : index
    %3 = vector.load %arg9[%c0_5, %c0_6] : memref<128x64xf32, #tpu.memory_space<vmem>>, vector<128x64xf32>
    %c0_7 = arith.constant 0 : index
    %c0_8 = arith.constant 0 : index
    %4 = vector.load %arg1[%c0_7, %c0_8] : memref<24x1xi32, #tpu.memory_space<vmem>>, vector<24x1xi32>
    %5 = tpu.iota {dimensions = array<i32: 1>} : vector<24x128xi32>
    %6 = vector.broadcast %4 : vector<24x1xi32> to vector<24x128xi32>
    %7 = arith.cmpi eq, %5, %6 : vector<24x128xi32>
    %8 = arith.extui %7 : vector<24x128xi1> to vector<24x128xi32>
    %9 = arith.sitofp %8 : vector<24x128xi32> to vector<24x128xf32>
    %cst = arith.constant dense<0.000000e+00> : vector<24x32xf32>
    %10 = tpu.matmul %9, %0, %cst {dimension_numbers = #tpu.dot_dimension_numbers<[1], [0], [0], [1], [0, 0, 1, 1], [], []>} : vector<24x128xf32>, vector<128x32xf32>, vector<24x32xf32> -> vector<24x32xf32>
    %11 = vector.extract_strided_slice %10 {offsets = [0, 0], sizes = [8, 32], strides = [1, 1]} : vector<24x32xf32> to vector<8x32xf32>
    %12 = vector.extract_strided_slice %10 {offsets = [8, 0], sizes = [8, 32], strides = [1, 1]} : vector<24x32xf32> to vector<8x32xf32>
    %13 = vector.extract_strided_slice %10 {offsets = [16, 0], sizes = [8, 32], strides = [1, 1]} : vector<24x32xf32> to vector<8x32xf32>
    %14 = tpu.iota {dimensions = array<i32: 1>} : vector<16x256xi32>
    %c0_9 = arith.constant 0 : index
    %c0_10 = arith.constant 0 : index
    %15 = vector.load %arg2[%c0_9, %c0_10] : memref<16x1xi32, #tpu.memory_space<vmem>>, vector<16x1xi32>
    %16 = vector.broadcast %15 : vector<16x1xi32> to vector<16x256xi32>
    %17 = arith.cmpi eq, %14, %16 : vector<16x256xi32>
    %c0_11 = arith.constant 0 : index
    %c0_12 = arith.constant 0 : index
    %18 = vector.load %arg3[%c0_11, %c0_12] : memref<16x1xi32, #tpu.memory_space<vmem>>, vector<16x1xi32>
    %c128_i32 = arith.constant 128 : i32
    %19 = vector.broadcast %c128_i32 : i32 to vector<16x1xi32>
    %20 = arith.addi %18, %19 : vector<16x1xi32>
    %21 = vector.broadcast %20 : vector<16x1xi32> to vector<16x256xi32>
    %22 = arith.cmpi eq, %14, %21 : vector<16x256xi32>
    %23 = arith.ori %17, %22 : vector<16x256xi1>
    %24 = arith.extui %23 : vector<16x256xi1> to vector<16x256xi32>
    %25 = arith.sitofp %24 : vector<16x256xi32> to vector<16x256xf32>
    %cst_13 = arith.constant dense<0.000000e+00> : vector<16x64xf32>
    %26 = tpu.matmul %25, %1, %cst_13 {dimension_numbers = #tpu.dot_dimension_numbers<[1], [0], [0], [1], [0, 0, 1, 1], [], []>} : vector<16x256xf32>, vector<256x64xf32>, vector<16x64xf32> -> vector<16x64xf32>
    %27 = vector.extract_strided_slice %26 {offsets = [0, 0], sizes = [8, 64], strides = [1, 1]} : vector<16x64xf32> to vector<8x64xf32>
    %28 = vector.extract_strided_slice %26 {offsets = [8, 0], sizes = [8, 64], strides = [1, 1]} : vector<16x64xf32> to vector<8x64xf32>
    %c0_14 = arith.constant 0 : index
    %c0_15 = arith.constant 0 : index
    %29 = vector.load %arg4[%c0_14, %c0_15] : memref<24x1xi32, #tpu.memory_space<vmem>>, vector<24x1xi32>
    %30 = tpu.iota {dimensions = array<i32: 1>} : vector<24x128xi32>
    %31 = vector.broadcast %29 : vector<24x1xi32> to vector<24x128xi32>
    %32 = arith.cmpi eq, %30, %31 : vector<24x128xi32>
    %33 = arith.extui %32 : vector<24x128xi1> to vector<24x128xi32>
    %34 = arith.sitofp %33 : vector<24x128xi32> to vector<24x128xf32>
    %cst_16 = arith.constant dense<0.000000e+00> : vector<24x32xf32>
    %35 = tpu.matmul %34, %2, %cst_16 {dimension_numbers = #tpu.dot_dimension_numbers<[1], [0], [0], [1], [0, 0, 1, 1], [], []>} : vector<24x128xf32>, vector<128x32xf32>, vector<24x32xf32> -> vector<24x32xf32>
    %36 = vector.extract_strided_slice %35 {offsets = [0, 0], sizes = [8, 32], strides = [1, 1]} : vector<24x32xf32> to vector<8x32xf32>
    %37 = vector.extract_strided_slice %35 {offsets = [8, 0], sizes = [8, 32], strides = [1, 1]} : vector<24x32xf32> to vector<8x32xf32>
    %38 = vector.extract_strided_slice %35 {offsets = [16, 0], sizes = [8, 32], strides = [1, 1]} : vector<24x32xf32> to vector<8x32xf32>
    %c0_17 = arith.constant 0 : index
    %c0_18 = arith.constant 0 : index
    %39 = vector.load %arg5[%c0_17, %c0_18] : memref<24x1xi32, #tpu.memory_space<vmem>>, vector<24x1xi32>
    %40 = tpu.iota {dimensions = array<i32: 1>} : vector<24x128xi32>
    %41 = vector.broadcast %39 : vector<24x1xi32> to vector<24x128xi32>
    %42 = arith.cmpi eq, %40, %41 : vector<24x128xi32>
    %43 = arith.extui %42 : vector<24x128xi1> to vector<24x128xi32>
    %44 = arith.sitofp %43 : vector<24x128xi32> to vector<24x128xf32>
    %cst_19 = arith.constant dense<0.000000e+00> : vector<24x64xf32>
    %45 = tpu.matmul %44, %3, %cst_19 {dimension_numbers = #tpu.dot_dimension_numbers<[1], [0], [0], [1], [0, 0, 1, 1], [], []>} : vector<24x128xf32>, vector<128x64xf32>, vector<24x64xf32> -> vector<24x64xf32>
    %46 = vector.extract_strided_slice %45 {offsets = [0, 0], sizes = [8, 64], strides = [1, 1]} : vector<24x64xf32> to vector<8x64xf32>
    %47 = vector.extract_strided_slice %45 {offsets = [8, 0], sizes = [8, 64], strides = [1, 1]} : vector<24x64xf32> to vector<8x64xf32>
    %48 = vector.extract_strided_slice %45 {offsets = [16, 0], sizes = [8, 64], strides = [1, 1]} : vector<24x64xf32> to vector<8x64xf32>
    %cst_20 = arith.constant 1.000000e+00 : f32
    %49 = vector.broadcast %cst_20 : f32 to vector<8x32xf32>
    %50 = arith.subf %49, %36 : vector<8x32xf32>
    %51 = arith.mulf %50, %11 : vector<8x32xf32>
    %cst_21 = arith.constant 1.000000e+00 : f32
    %52 = vector.broadcast %cst_21 : f32 to vector<8x64xf32>
    %53 = arith.subf %52, %46 : vector<8x64xf32>
    %54 = arith.mulf %53, %27 : vector<8x64xf32>
    %cst_22 = arith.constant 1.000000e+00 : f32
    %55 = vector.broadcast %cst_22 : f32 to vector<8x32xf32>
    %56 = arith.subf %55, %37 : vector<8x32xf32>
    %57 = arith.mulf %56, %12 : vector<8x32xf32>
    %cst_23 = arith.constant 1.000000e+00 : f32
    %58 = vector.broadcast %cst_23 : f32 to vector<8x64xf32>
    %59 = arith.subf %58, %47 : vector<8x64xf32>
    %60 = arith.mulf %59, %28 : vector<8x64xf32>
    %cst_24 = arith.constant 1.000000e+00 : f32
    %61 = vector.broadcast %cst_24 : f32 to vector<8x32xf32>
    %62 = arith.subf %61, %38 : vector<8x32xf32>
    %63 = arith.mulf %38, %62 : vector<8x32xf32>
    %cst_25 = arith.constant 1.000000e+00 : f32
    %64 = vector.broadcast %cst_25 : f32 to vector<8x64xf32>
    %65 = arith.subf %64, %48 : vector<8x64xf32>
    %66 = arith.mulf %48, %65 : vector<8x64xf32>
    %67 = arith.mulf %51, %51 : vector<8x32xf32>
    %c0_26 = arith.constant 0 : index
    %c0_27 = arith.constant 0 : index
    %c0_28 = arith.constant 0 : index
    %68 = vector.load %arg10[%c0_26, %c0_27, %c0_28] : memref<9x64x128xf32, #tpu.memory_space<vmem>>, vector<1x64x128xf32>
    %69 = vector.shape_cast %68 : vector<1x64x128xf32> to vector<64x128xf32>
    %70 = vector.extract_strided_slice %69 {offsets = [0, 0], sizes = [32, 128], strides = [1, 1]} : vector<64x128xf32> to vector<32x128xf32>
    %cst_29 = arith.constant dense<0.000000e+00> : vector<8x128xf32>
    %71 = tpu.matmul %67, %70, %cst_29 {dimension_numbers = #tpu.dot_dimension_numbers<[1], [0], [0], [1], [0, 0, 1, 1], [], []>} : vector<8x32xf32>, vector<32x128xf32>, vector<8x128xf32> -> vector<8x128xf32>
    %72 = arith.mulf %54, %54 : vector<8x64xf32>
    %c1 = arith.constant 1 : index
    %c0_30 = arith.constant 0 : index
    %c0_31 = arith.constant 0 : index
    %73 = vector.load %arg10[%c1, %c0_30, %c0_31] : memref<9x64x128xf32, #tpu.memory_space<vmem>>, vector<1x64x128xf32>
    %74 = vector.shape_cast %73 : vector<1x64x128xf32> to vector<64x128xf32>
    %cst_32 = arith.constant dense<0.000000e+00> : vector<8x128xf32>
    %75 = tpu.matmul %72, %74, %cst_32 {dimension_numbers = #tpu.dot_dimension_numbers<[1], [0], [0], [1], [0, 0, 1, 1], [], []>} : vector<8x64xf32>, vector<64x128xf32>, vector<8x128xf32> -> vector<8x128xf32>
    %76 = arith.addf %71, %75 : vector<8x128xf32>
    %77 = arith.mulf %57, %57 : vector<8x32xf32>
    %c2 = arith.constant 2 : index
    %c0_33 = arith.constant 0 : index
    %c0_34 = arith.constant 0 : index
    %78 = vector.load %arg10[%c2, %c0_33, %c0_34] : memref<9x64x128xf32, #tpu.memory_space<vmem>>, vector<1x64x128xf32>
    %79 = vector.shape_cast %78 : vector<1x64x128xf32> to vector<64x128xf32>
    %80 = vector.extract_strided_slice %79 {offsets = [0, 0], sizes = [32, 128], strides = [1, 1]} : vector<64x128xf32> to vector<32x128xf32>
    %cst_35 = arith.constant dense<0.000000e+00> : vector<8x128xf32>
    %81 = tpu.matmul %77, %80, %cst_35 {dimension_numbers = #tpu.dot_dimension_numbers<[1], [0], [0], [1], [0, 0, 1, 1], [], []>} : vector<8x32xf32>, vector<32x128xf32>, vector<8x128xf32> -> vector<8x128xf32>
    %82 = arith.addf %76, %81 : vector<8x128xf32>
    %83 = arith.mulf %60, %60 : vector<8x64xf32>
    %c3 = arith.constant 3 : index
    %c0_36 = arith.constant 0 : index
    %c0_37 = arith.constant 0 : index
    %84 = vector.load %arg10[%c3, %c0_36, %c0_37] : memref<9x64x128xf32, #tpu.memory_space<vmem>>, vector<1x64x128xf32>
    %85 = vector.shape_cast %84 : vector<1x64x128xf32> to vector<64x128xf32>
    %cst_38 = arith.constant dense<0.000000e+00> : vector<8x128xf32>
    %86 = tpu.matmul %83, %85, %cst_38 {dimension_numbers = #tpu.dot_dimension_numbers<[1], [0], [0], [1], [0, 0, 1, 1], [], []>} : vector<8x64xf32>, vector<64x128xf32>, vector<8x128xf32> -> vector<8x128xf32>
    %87 = arith.addf %82, %86 : vector<8x128xf32>
    %88 = arith.mulf %13, %13 : vector<8x32xf32>
    %c4 = arith.constant 4 : index
    %c0_39 = arith.constant 0 : index
    %c0_40 = arith.constant 0 : index
    %89 = vector.load %arg10[%c4, %c0_39, %c0_40] : memref<9x64x128xf32, #tpu.memory_space<vmem>>, vector<1x64x128xf32>
    %90 = vector.shape_cast %89 : vector<1x64x128xf32> to vector<64x128xf32>
    %91 = vector.extract_strided_slice %90 {offsets = [0, 0], sizes = [32, 128], strides = [1, 1]} : vector<64x128xf32> to vector<32x128xf32>
    %cst_41 = arith.constant dense<0.000000e+00> : vector<8x128xf32>
    %92 = tpu.matmul %88, %91, %cst_41 {dimension_numbers = #tpu.dot_dimension_numbers<[1], [0], [0], [1], [0, 0, 1, 1], [], []>} : vector<8x32xf32>, vector<32x128xf32>, vector<8x128xf32> -> vector<8x128xf32>
    %93 = arith.addf %87, %92 : vector<8x128xf32>
    %94 = arith.mulf %63, %63 : vector<8x32xf32>
    %c5 = arith.constant 5 : index
    %c0_42 = arith.constant 0 : index
    %c0_43 = arith.constant 0 : index
    %95 = vector.load %arg10[%c5, %c0_42, %c0_43] : memref<9x64x128xf32, #tpu.memory_space<vmem>>, vector<1x64x128xf32>
    %96 = vector.shape_cast %95 : vector<1x64x128xf32> to vector<64x128xf32>
    %97 = vector.extract_strided_slice %96 {offsets = [0, 0], sizes = [32, 128], strides = [1, 1]} : vector<64x128xf32> to vector<32x128xf32>
    %cst_44 = arith.constant dense<0.000000e+00> : vector<8x128xf32>
    %98 = tpu.matmul %94, %97, %cst_44 {dimension_numbers = #tpu.dot_dimension_numbers<[1], [0], [0], [1], [0, 0, 1, 1], [], []>} : vector<8x32xf32>, vector<32x128xf32>, vector<8x128xf32> -> vector<8x128xf32>
    %99 = arith.addf %93, %98 : vector<8x128xf32>
    %100 = arith.mulf %66, %66 : vector<8x64xf32>
    %c6 = arith.constant 6 : index
    %c0_45 = arith.constant 0 : index
    %c0_46 = arith.constant 0 : index
    %101 = vector.load %arg10[%c6, %c0_45, %c0_46] : memref<9x64x128xf32, #tpu.memory_space<vmem>>, vector<1x64x128xf32>
    %102 = vector.shape_cast %101 : vector<1x64x128xf32> to vector<64x128xf32>
    %cst_47 = arith.constant dense<0.000000e+00> : vector<8x128xf32>
    %103 = tpu.matmul %100, %102, %cst_47 {dimension_numbers = #tpu.dot_dimension_numbers<[1], [0], [0], [1], [0, 0, 1, 1], [], []>} : vector<8x64xf32>, vector<64x128xf32>, vector<8x128xf32> -> vector<8x128xf32>
    %104 = arith.addf %99, %103 : vector<8x128xf32>
    %105 = math.absf %38 : vector<8x32xf32>
    %c7 = arith.constant 7 : index
    %c0_48 = arith.constant 0 : index
    %c0_49 = arith.constant 0 : index
    %106 = vector.load %arg10[%c7, %c0_48, %c0_49] : memref<9x64x128xf32, #tpu.memory_space<vmem>>, vector<1x64x128xf32>
    %107 = vector.shape_cast %106 : vector<1x64x128xf32> to vector<64x128xf32>
    %108 = vector.extract_strided_slice %107 {offsets = [0, 0], sizes = [32, 128], strides = [1, 1]} : vector<64x128xf32> to vector<32x128xf32>
    %cst_50 = arith.constant dense<0.000000e+00> : vector<8x128xf32>
    %109 = tpu.matmul %105, %108, %cst_50 {dimension_numbers = #tpu.dot_dimension_numbers<[1], [0], [0], [1], [0, 0, 1, 1], [], []>} : vector<8x32xf32>, vector<32x128xf32>, vector<8x128xf32> -> vector<8x128xf32>
    %110 = arith.addf %104, %109 : vector<8x128xf32>
    %111 = math.absf %48 : vector<8x64xf32>
    %c8 = arith.constant 8 : index
    %c0_51 = arith.constant 0 : index
    %c0_52 = arith.constant 0 : index
    %112 = vector.load %arg10[%c8, %c0_51, %c0_52] : memref<9x64x128xf32, #tpu.memory_space<vmem>>, vector<1x64x128xf32>
    %113 = vector.shape_cast %112 : vector<1x64x128xf32> to vector<64x128xf32>
    %cst_53 = arith.constant dense<0.000000e+00> : vector<8x128xf32>
    %114 = tpu.matmul %111, %113, %cst_53 {dimension_numbers = #tpu.dot_dimension_numbers<[1], [0], [0], [1], [0, 0, 1, 1], [], []>} : vector<8x64xf32>, vector<64x128xf32>, vector<8x128xf32> -> vector<8x128xf32>
    %115 = arith.addf %110, %114 : vector<8x128xf32>
    %116 = tpu.iota {dimensions = array<i32: 1>} : vector<8x128xi32>
    %c2_i32 = arith.constant 2 : i32
    %117 = vector.broadcast %c2_i32 : i32 to vector<8x128xi32>
    %118 = arith.cmpi eq, %116, %117 : vector<8x128xi32>
    %c3_i32 = arith.constant 3 : i32
    %119 = vector.broadcast %c3_i32 : i32 to vector<8x128xi32>
    %120 = arith.cmpi eq, %116, %119 : vector<8x128xi32>
    %121 = arith.ori %118, %120 : vector<8x128xi1>
    %c7_i32 = arith.constant 7 : i32
    %122 = vector.broadcast %c7_i32 : i32 to vector<8x128xi32>
    %123 = arith.cmpi sge, %116, %122 : vector<8x128xi32>
    %c9_i32 = arith.constant 9 : i32
    %124 = vector.broadcast %c9_i32 : i32 to vector<8x128xi32>
    %125 = arith.cmpi sle, %116, %124 : vector<8x128xi32>
    %126 = arith.andi %123, %125 : vector<8x128xi1>
    %127 = arith.ori %121, %126 : vector<8x128xi1>
    %cst_54 = arith.constant 1.000000e+00 : f32
    %cst_55 = arith.constant 1.000000e+00 : f32
    %128 = vector.broadcast %cst_54 : f32 to vector<8x128xf32>
    %129 = vector.broadcast %cst_55 : f32 to vector<8x128xf32>
    %130 = arith.select %121, %128, %129 : vector<8x128xi1>, vector<8x128xf32>
    %131 = arith.subf %130, %115 : vector<8x128xf32>
    %cst_56 = arith.constant 0.000000e+00 : f32
    %132 = vector.broadcast %cst_56 : f32 to vector<8x128xf32>
    %133 = arith.maximumf %131, %132 : vector<8x128xf32>
    %134 = arith.select %127, %133, %115 : vector<8x128xi1>, vector<8x128xf32>
    %cst_57 = arith.constant 1.000000e+00 : f32
    %135 = vector.broadcast %cst_57 : f32 to vector<8x128xf32>
    %136 = arith.subf %115, %135 : vector<8x128xf32>
    %c4_i32 = arith.constant 4 : i32
    %137 = vector.broadcast %c4_i32 : i32 to vector<8x128xi32>
    %138 = arith.cmpi eq, %116, %137 : vector<8x128xi32>
    %139 = arith.mulf %136, %136 : vector<8x128xf32>
    %140 = arith.select %138, %139, %134 : vector<8x128xi1>, vector<8x128xf32>
    %c0_58 = arith.constant 0 : index
    %c0_59 = arith.constant 0 : index
    %141 = vector.load %arg11[%c0_58, %c0_59] : memref<8x128xf32, #tpu.memory_space<vmem>>, vector<8x128xf32>
    tpu.vector_store %arg11[%c0_58, %c0_59], %140 {strides = array<i32>} : memref<8x128xf32, #tpu.memory_space<vmem>>, vector<8x128xf32>,
    return
  }
  func.func @transform_0(%arg0: i32) -> (i32, i32) {
    %c0_i32 = arith.constant 0 : i32
    %c0_i32_0 = arith.constant 0 : i32
    return %arg0, %c0_i32 : i32, i32
  }
  func.func @transform_1(%arg0: i32) -> (i32, i32) {
    %c0_i32 = arith.constant 0 : i32
    %c0_i32_0 = arith.constant 0 : i32
    return %arg0, %c0_i32 : i32, i32
  }
  func.func @transform_2(%arg0: i32) -> (i32, i32) {
    %c0_i32 = arith.constant 0 : i32
    %c0_i32_0 = arith.constant 0 : i32
    return %arg0, %c0_i32 : i32, i32
  }
  func.func @transform_3(%arg0: i32) -> (i32, i32) {
    %c0_i32 = arith.constant 0 : i32
    %c0_i32_0 = arith.constant 0 : i32
    return %arg0, %c0_i32 : i32, i32
  }
  func.func @transform_4(%arg0: i32) -> (i32, i32) {
    %c0_i32 = arith.constant 0 : i32
    %c0_i32_0 = arith.constant 0 : i32
    return %arg0, %c0_i32 : i32, i32
  }
  func.func @transform_5(%arg0: i32) -> (i32, i32) {
    %c0_i32 = arith.constant 0 : i32
    %c0_i32_0 = arith.constant 0 : i32
    %c0_i32_1 = arith.constant 0 : i32
    return %c0_i32, %c0_i32_0 : i32, i32
  }
  func.func @transform_6(%arg0: i32) -> (i32, i32) {
    %c0_i32 = arith.constant 0 : i32
    %c0_i32_0 = arith.constant 0 : i32
    %c0_i32_1 = arith.constant 0 : i32
    return %c0_i32, %c0_i32_0 : i32, i32
  }
  func.func @transform_7(%arg0: i32) -> (i32, i32) {
    %c0_i32 = arith.constant 0 : i32
    %c0_i32_0 = arith.constant 0 : i32
    %c0_i32_1 = arith.constant 0 : i32
    return %c0_i32, %c0_i32_0 : i32, i32
  }
  func.func @transform_8(%arg0: i32) -> (i32, i32) {
    %c0_i32 = arith.constant 0 : i32
    %c0_i32_0 = arith.constant 0 : i32
    %c0_i32_1 = arith.constant 0 : i32
    return %c0_i32, %c0_i32_0 : i32, i32
  }
  func.func @transform_9(%arg0: i32) -> (i32, i32, i32) {
    %c0_i32 = arith.constant 0 : i32
    %c0_i32_0 = arith.constant 0 : i32
    %c0_i32_1 = arith.constant 0 : i32
    %c0_i32_2 = arith.constant 0 : i32
    return %c0_i32, %c0_i32_0, %c0_i32_1 : i32, i32, i32
  }
  func.func @transform_10(%arg0: i32) -> (i32, i32) {
    %c0_i32 = arith.constant 0 : i32
    %c0_i32_0 = arith.constant 0 : i32
    return %arg0, %c0_i32 : i32, i32
  }
}

</mosaic_0001>

<bundles_post_ra>
// kernel: tpu_custom_call.1
= control target key start
LH: loop header
LB: loop body
LE: loop exit
PB: predicated region body
PF: predicated region fallthrough
CT: control target
= control target key end

     0   :  { %15 = vsyncpa [#allocation3], 0  ;;  %s3236_s0 = inlined_call_operand.vmem [shape: s32[48,1], index: 0, kind: input, shape index: {}]   ;;  %s3237_s1 = inlined_call_operand.vmem [shape: s32[32,1], index: 1, kind: input, shape index: {}]   ;;  %s3238_s2 = inlined_call_operand.vmem [shape: s32[32,1], index: 2, kind: input, shape index: {}]   ;;  %s3239_s3 = inlined_call_operand.vmem [shape: s32[48,1], index: 3, kind: input, shape index: {}]   ;;  %s3240_s4 = inlined_call_operand.vmem [shape: s32[48,1], index: 4, kind: input, shape index: {}]   ;;  %s3241_s5 = inlined_call_operand.vmem [shape: f32[128,32], index: 5, kind: input, shape index: {}]   ;;  %s3242_s6 = inlined_call_operand.vmem [shape: f32[256,64], index: 6, kind: input, shape index: {}]   ;;  %s3243_s7 = inlined_call_operand.vmem [shape: f32[128,32], index: 7, kind: input, shape index: {}]   ;;  %s3244_s8 = inlined_call_operand.vmem [shape: f32[128,64], index: 8, kind: input, shape index: {}]   ;;  %s3245_s9 = inlined_call_operand.vmem [shape: f32[9,64,128], index: 9, kind: input, shape index: {}]   ;;  %s3246_s10 = inlined_call_operand.hbm [shape: f32[16,128], index: 10, kind: output, shape index: {}]  }
   0x1   :  { %17 = vsyncpa [#allocation3 + $0x1], 0  ;;  %s2507_s13 = smov 0   ;;  %s2509_s14 = smov 0  }
   0x2   :  { %s2511_s15 = smov 0   ;;  %s2513_s16 = smov 0  }
   0x3 LB: > { %3248 = sst [smem:[#allocation5_spill]] %s2441_s15  ;;  %s2528_s17 = sadd.s32 4294967295, %s2445_s16   ;;  %s2445_s16 = sphi %s2513_s16, %s3258_s16   ;;  %s2441_s15 = sphi %s2511_s15, %s3255_s15   ;;  %s2437_s14 = sphi %s2509_s14, %s3257_s14   ;;  %s2433_s13 = sphi %s2507_s13, %s3256_s13  }
   0x4   : > { %s1830_s18 = sadd.s32 4294967294, %s2445_s16   ;;  %s2532_s19 = sadd.s32 1, %s2445_s16  }
   0x5   : > { %s265_s20 = sadd.s32 1, %s2441_s15  ;;  %s262_s21 = ssub.s32 %s2445_s16, %s2532_s19 }
   0x6   : > { %p275_p0 = scmp.ne.s32.totalorder %s2441_s15, %s2437_s14  ;;  %p263_p1 = scmp.eq.s32.totalorder %s262_s21, 0 }
   0x7   : > { %p276_p2 = scmp.eq.s32.totalorder %s2528_s17, 1  ;;  %p281_p3 = scmp.ne.s32.totalorder %s2437_s14, %s2433_s13 }
   0x8   : > { %p282_p4 = scmp.eq.s32.totalorder %s1830_s18, 1  ;;  %p1833_p7 = scmp.ge.s32.totalorder %s2445_s16, 1 }
   0x9   : > { %s2543_s22 = scalar_select %p263_p1, %s2441_s15, %s265_s20  }
   0xa   : > { %p2545_p5 = por %p276_p2, %p275_p0  ;;  %p2549_p6 = por %p282_p4, %p281_p3 }
   0xb   : > { %3249 = sst [smem:[#allocation6_spill]] %s2543_s22  ;;  %p360_p8 = scmp.lt.s32.totalorder %s2445_s16, 3 }
   0xd   : > { %p361_p9 = pnand %p1833_p7, %p360_p8 }
   0xe   : > { %s1836_s25 = sshll.u32 (!%p361_p9), %s2528_s17, 1  ;;  %s418_s26 = smul.u32 (!%p361_p9), 3, %s2528_s17 }
   0xf   : > { %364 = sbr.rel (%p361_p9) target bundleno = 658 (0x292), region = 60  ;;  %p425_p10 = scmp.lt.s32.totalorder (!%p361_p9), %s1836_s25, 3 }
  0x10   : > { %p419_p11 = scmp.lt.s32.totalorder (!%p361_p9), %s418_s26, 5  ;;  %s1927_s11 = sshll.u32 (!%p361_p9), %s2528_s17, 7 }
  0x11   : > { %s3201_s12 = scalar_lea.hbm (!%p361_p9), %s3246_s10, %s1927_s11  ;;  %s2451_s17 = smov (!%p361_p9), [#allocation2]  }
  0x14   : > { %v463_v0 = vld [vmem:[%s3241_s5 + $0x78] sm:$0xff]  ;;  %v2447_v1 = vmov 0   ;;  %v2448_v4 = vmov 0.0   ;;  %v462_v5 = vld [vmem:[%s3241_s5 + $0x70] sm:$0xff]  ;;  %s3260_s25 = smov (!%p425_p10, %s1836_s25), 3  ;;  %v493_v8 = vld [vmem:[%s3242_s6 + $0xe8] sm:$0xff] }
  0x15   : > { %2383 = vset.pattern.permute.xlu0 %v2447_v1  ;;  %2384 = vset.pattern.permute.xlu1 %v2447_v1  ;;  %v495_v2 = vld [vmem:[%s3242_s6 + $0xf8] sm:$0xff]  ;;  %v494_v6 = vld [vmem:[%s3242_s6 + $0xf0] sm:$0xff]  ;;  %s3262_s26 = smov (!%p419_p11, %s418_s26), 5  ;;  %v461_v9 = vld [vmem:[%s3241_s5 + $0x68] sm:$0xff]  ;;  %s1837_s27 = sshll.u32 %s3260_s25, 3  ;;  %vm2449_vm0 = vmmov 0   ;;  %v531_v1 = vlaneseq }
  0x16   : > { %v479_v3 = vld [vmem:[%s3242_s6 + $0x78] sm:$0xff]  ;;  %2086 = vmatprep.subr.mxu0 %v2448_v4  ;;  %1949 = vmatprep.subr.mxu1 %v495_v2  ;;  %v478_v7 = vld [vmem:[%s3242_s6 + $0x70] sm:$0xff]  ;;  %v477_v10 = vld [vmem:[%s3242_s6 + $0x68] sm:$0xff]  ;;  %s2589_s30 = scalar_lea.vmem %s3237_s1, %s1837_s27  ;;  %s434_s15 = scalar_lea.vmem %s3238_s2, %s1837_s27 }
  0x17   : > { %2087 = vmatpush3.msra.mxu0 %v463_v0  ;;  %1950 = vmatpush3.msra.mxu1 %v479_v3  ;;  %v460_v11 = vld [vmem:[%s3241_s5 + $0x60] sm:$0xff]  ;;  %s2602_s21 = sshll.u32 %s3262_s26, 3  ;;  %v459_v16 = vld [vmem:[%s3241_s5 + $0x58] sm:$0xff]  ;;  %v458_v19 = vld [vmem:[%s3241_s5 + $0x50] sm:$0xff]  ;;  %v2760_v2 = vand.u32 127, %v531_v1 }
  0x18   : > { %2088 = vmatprep.subr.mxu0 %v2448_v4  ;;  %1951 = vmatprep.subr.mxu1 %v494_v6  ;;  %v492_v12 = vld [vmem:[%s3242_s6 + $0xe0] sm:$0xff]  ;;  %s2608_s28 = scalar_lea.vmem %s3236_s0, %s2602_s21  ;;  %v491_v20 = vld [vmem:[%s3242_s6 + $0xd8] sm:$0xff]  ;;  %v645_v22 = vld [vmem:[%s434_s15 + $0x8] sm:$0xff]  ;;  %s2645_s22 = scalar_lea.vmem %s3239_s3, %s2602_s21 }
  0x19   : > { %2089 = vmatpush3.msra.mxu0 %v462_v5  ;;  %1952 = vmatpush3.msra.mxu1 %v478_v7  ;;  %v632_v13 = vld [vmem:[%s2589_s30] sm:$0xff]  ;;  %v529_v21 = vld [vmem:[%s2608_s28 + $0x8] sm:$0xff]  ;;  %v475_v24 = vld [vmem:[%s3242_s6 + $0x58] sm:$0xff]  ;;  %v647_v26 = vadd.s32 128, %v645_v22  ;;  %s2662_s20 = scalar_lea.vmem %s3240_s4, %s2602_s21  ;;  %v631_v7 = vadd.s32 128, %v2760_v2 }
  0x1a   : > { %2090 = vmatprep.subr.mxu0 %v2448_v4  ;;  %1953 = vmatprep.subr.mxu1 %v493_v8  ;;  %v644_v14 = vld [vmem:[%s434_s15] sm:$0xff]  ;;  %v457_v23 = vld [vmem:[%s3241_s5 + $0x48] sm:$0xff]  ;;  %v490_v28 = vld [vmem:[%s3242_s6 + $0xd0] sm:$0xff]  ;;  %v2450_v8 = vmov 1.0  }
  0x1b   : > { %2091 = vmatpush3.msra.mxu0 %v461_v9  ;;  %1954 = vmatpush3.msra.mxu1 %v477_v10  ;;  %v646_v15 = vadd.s32 128, %v644_v14  ;;  %v476_v17 = vld [vmem:[%s3242_s6 + $0x60] sm:$0xff]  ;;  %v633_v25 = vld [vmem:[%s2589_s30 + $0x8] sm:$0xff]  ;;  %v474_v29 = vld [vmem:[%s3242_s6 + $0x50] sm:$0xff] }
  0x1c   : > { %635 = vperm.xlu0 %2383, %v632_v13   ;;  %2092 = vmatprep.subr.mxu0 %v2448_v4  ;;  %v528_v18 = vld [vmem:[%s2608_s28] sm:$0xff]  ;;  %v455_v30 = vld [vmem:[%s3241_s5 + $0x38] sm:$0xff]  ;;  %v530_v31 = vld [vmem:[%s2608_s28 + $0x10] sm:$0xff]  ;;  %s415_s28 = sand.u32 1, %s2437_s14  }
  0x1d   : > { %2093 = vmatpush3.msra.mxu0 %v460_v11  ;;  %1955 = vmatprep.subr.mxu1 %v492_v12  ;;  %v456_v27 = vld [vmem:[%s3241_s5 + $0x40] sm:$0xff]  ;;  %v489_v32 = vld [vmem:[%s3242_s6 + $0xc8] sm:$0xff]  ;;  %v454_v35 = vld [vmem:[%s3241_s5 + $0x30] sm:$0xff]  ;;  %s1834_s29 = sshll.u32 %s415_s28, 3  ;;  %s1710_s18 = scalar_lea.sflag [#allocation3], %s415_s28 }
  0x1e   : > { %534 = vperm.xlu1 %2384, %v528_v18   ;;  %2094 = vmatprep.subr.mxu0 %v2448_v4  ;;  %v473_v33 = vld [vmem:[%s3242_s6 + $0x48] sm:$0xff]  ;;  %v745_v34 = vld [vmem:[%s2645_s22] sm:$0xff]  ;;  %v487_v40 = vld [vmem:[%s3242_s6 + $0xb8] sm:$0xff]  ;;  %s417_s21 = scalar_lea.vmem [#allocation2], %s1834_s29 }
  0x1f   : > { %2095 = vmatpush3.msra.mxu0 %v459_v16  ;;  %1956 = vmatpush3.msra.mxu1 %v476_v17  ;;  %v488_v36 = vld [vmem:[%s3242_s6 + $0xc0] sm:$0xff]  ;;  %v453_v39 = vld [vmem:[%s3241_s5 + $0x28] sm:$0xff]  ;;  %v471_v42 = vld [vmem:[%s3242_s6 + $0x38] sm:$0xff]  ;;  %s1723_s26 = sshll.u32 %s417_s21, 4  ;;  %s1724_s26 = int_to_ptr.vmem [resolvable:$true] %s1723_s26 }
  0x20   : > { %649 = vperm.xlu0 %2383, %v646_v15   ;;  %2096 = vmatprep.subr.mxu0 %v2448_v4  ;;  %v846_v37 = vld [vmem:[%s2662_s20] sm:$0xff]  ;;  %v746_v41 = vld [vmem:[%s2645_s22 + $0x8] sm:$0xff]  ;;  %v747_v44 = vld [vmem:[%s2645_s22 + $0x10] sm:$0xff]  ;;  %s2385_s25 = scalar_lea.vmem %s1724_s26, 128  ;;  %s2389_s22 = sshll.u32 %s2451_s17, 4  ;;  %s2390_s22 = int_to_ptr.vmem [resolvable:$false] %s2389_s22 }
  0x21   : > { %2097 = vmatpush3.msra.mxu0 %v458_v19  ;;  %1957 = vmatprep.subr.mxu1 %v491_v20  ;;  %v472_v38 = vld [vmem:[%s3242_s6 + $0x40] sm:$0xff]  ;;  %v486_v45 = vld [vmem:[%s3242_s6 + $0xb0] sm:$0xff]  ;;  %v847_v47 = vld [vmem:[%s2662_s20 + $0x8] sm:$0xff]  ;;  %p2386_p12 = scmp.ne.s32.totalorder %s1724_s26, %s2385_s25  ;;  %s2391_s30 = scalar_lea.vmem %s2390_s22, 256 }
  0x22   : > { %537 = vperm.xlu1 %2384, %v529_v21   ;;  %2098 = vmatprep.subr.mxu0 %v2448_v4  ;;  %v452_v43 = vld [vmem:[%s3241_s5 + $0x20] sm:$0xff]  ;;  %v470_v46 = vld [vmem:[%s3242_s6 + $0x30] sm:$0xff]  ;;  %v451_v48 = vld [vmem:[%s3241_s5 + $0x18] sm:$0xff]  ;;  %p2392_p1 = scmp.lt.s32.totalorder %s1724_s26, %s2390_s22  ;;  %p2393_p2 = scmp.lt.s32.totalorder %s2391_s30, %s2385_s25 }
  0x23   : > { %2099 = vmatpush3.msra.mxu0 %v457_v23  ;;  %1958 = vmatpush3.msra.mxu1 %v475_v24  ;;  %v485_v49 = vld [vmem:[%s3242_s6 + $0xa8] sm:$0xff]  ;;  %v848_v50 = vld [vmem:[%s2662_s20 + $0x10] sm:$0xff]  ;;  %v484_v53 = vld [vmem:[%s3242_s6 + $0xa0] sm:$0xff]  ;;  %p2387_p13 = pnand %p2386_p12, %p2545_p5 }
  0x24   : > { %638 = vperm.xlu0 %2383, %v633_v25   ;;  %2100 = vmatprep.subr.mxu0 %v2448_v4  ;;  %v469_v51 = vld [vmem:[%s3242_s6 + $0x28] sm:$0xff]  ;;  %v450_v52 = vld [vmem:[%s3241_s5 + $0x10] sm:$0xff]  ;;  %v468_v54 = vld [vmem:[%s3242_s6 + $0x20] sm:$0xff]  ;;  %p2394_p3 = por %p2393_p2, %p2392_p1 }
  0x25   : > { %2101 = vmatpush3.msra.mxu0 %v456_v27  ;;  %1959 = vmatprep.subr.mxu1 %v490_v28  ;;  %v449_v55 = vld [vmem:[%s3241_s5 + $0x8] sm:$0xff]  ;;  %v483_v56 = vld [vmem:[%s3242_s6 + $0x98] sm:$0xff]  ;;  %v448_v58 = vld [vmem:[%s3241_s5] sm:$0xff]  ;;  %p2388_p0 = pneg %p2387_p13 }
  0x26   : > { %652 = vperm.xlu1 %2384, %v647_v26   ;;  %2102 = vmatprep.subr.mxu0 %v2448_v4  ;;  %v467_v57 = vld [vmem:[%s3242_s6 + $0x18] sm:$0xff]  ;;  %v482_v59 = vld [vmem:[%s3242_s6 + $0x90] sm:$0xff]  ;;  %v481_v61 = vld [vmem:[%s3242_s6 + $0x88] sm:$0xff] }
  0x27   : > { %1960 = vmatpush3.msra.mxu1 %v474_v29  ;;  %2103 = vmatpush3.msra.mxu0 %v455_v30  ;;  %v466_v60 = vld [vmem:[%s3242_s6 + $0x10] sm:$0xff]  ;;  %v465_v62 = vld [vmem:[%s3242_s6 + $0x8] sm:$0xff]  ;;  %v480_v63 = vld [vmem:[%s3242_s6 + $0x80] sm:$0xff]  ;;  %p2395_p4 = pnand %p2394_p3, %p2388_p0 }
  0x28   : > { %540 = vperm.xlu0 %2383, %v530_v31   ;;  %1961 = vmatprep.subr.mxu1 %v489_v32  ;;  %v464_v0 = vld [vmem:[%s3242_s6] sm:$0xff]  ;;  %v511_v6 = vld [vmem:[%s3243_s7 + $0x78] sm:$0xff]  ;;  %v510_v10 = vld [vmem:[%s3243_s7 + $0x70] sm:$0xff] }
  0x29   : > { %2104 = vmatprep.subr.mxu0 %v2448_v4  ;;  %1962 = vmatpush3.msra.mxu1 %v473_v33  ;;  %v509_v13 = vld [vmem:[%s3243_s7 + $0x68] sm:$0xff]  ;;  %v527_v14 = vld [vmem:[%s3244_s8 + $0x78] sm:$0xff]  ;;  %v508_v16 = vld [vmem:[%s3243_s7 + $0x60] sm:$0xff] }
  0x2a   : > { %749 = vperm.xlu1 %2384, %v745_v34   ;;  %2105 = vmatpush3.msra.mxu0 %v454_v35  ;;  %v526_v18 = vld [vmem:[%s3244_s8 + $0x70] sm:$0xff]  ;;  %v507_v19 = vld [vmem:[%s3243_s7 + $0x58] sm:$0xff]  ;;  %v525_v20 = vld [vmem:[%s3244_s8 + $0x68] sm:$0xff] }
  0x2b   : > { %1963 = vmatprep.subr.mxu1 %v488_v36  ;;  %2106 = vmatprep.subr.mxu0 %v2448_v4  ;;  %v506_v22 = vld [vmem:[%s3243_s7 + $0x50] sm:$0xff]  ;;  %v524_v23 = vld [vmem:[%s3244_s8 + $0x60] sm:$0xff]  ;;  %v505_v24 = vld [vmem:[%s3243_s7 + $0x48] sm:$0xff] }
  0x2c   : > { %850 = vperm.xlu0 %2383, %v846_v37   ;;  %1964 = vmatpush3.msra.mxu1 %v472_v38  ;;  %v523_v25 = vld [vmem:[%s3244_s8 + $0x58] sm:$0xff]  ;;  %v504_v26 = vld [vmem:[%s3243_s7 + $0x40] sm:$0xff]  ;;  %v522_v27 = vld [vmem:[%s3244_s8 + $0x50] sm:$0xff] }
  0x2d   : > { %2107 = vmatpush3.msra.mxu0 %v453_v39  ;;  %1965 = vmatprep.subr.mxu1 %v487_v40  ;;  %v503_v28 = vld [vmem:[%s3243_s7 + $0x38] sm:$0xff]  ;;  %v521_v29 = vld [vmem:[%s3244_s8 + $0x48] sm:$0xff]  ;;  %v502_v30 = vld [vmem:[%s3243_s7 + $0x30] sm:$0xff] }
  0x2e   : > { %752 = vperm.xlu1 %2384, %v746_v41   ;;  %2108 = vmatprep.subr.mxu0 %v2448_v4  ;;  %v520_v31 = vld [vmem:[%s3244_s8 + $0x40] sm:$0xff]  ;;  %v501_v32 = vld [vmem:[%s3243_s7 + $0x28] sm:$0xff]  ;;  %v519_v33 = vld [vmem:[%s3244_s8 + $0x38] sm:$0xff] }
  0x2f   : > { %1966 = vmatpush3.msra.mxu1 %v471_v42  ;;  %2109 = vmatpush3.msra.mxu0 %v452_v43  ;;  %v500_v34 = vld [vmem:[%s3243_s7 + $0x20] sm:$0xff]  ;;  %v518_v35 = vld [vmem:[%s3244_s8 + $0x30] sm:$0xff]  ;;  %v499_v36 = vld [vmem:[%s3243_s7 + $0x18] sm:$0xff] }
  0x30   : > { %755 = vperm.xlu0 %2383, %v747_v44   ;;  %1967 = vmatprep.subr.mxu1 %v486_v45  ;;  %v517_v37 = vld [vmem:[%s3244_s8 + $0x28] sm:$0xff]  ;;  %v498_v38 = vld [vmem:[%s3243_s7 + $0x10] sm:$0xff]  ;;  %v516_v40 = vld [vmem:[%s3244_s8 + $0x20] sm:$0xff] }
  0x31   : > { %2110 = vmatprep.subr.mxu0 %v2448_v4  ;;  %1968 = vmatpush3.msra.mxu1 %v470_v46  ;;  %v497_v41 = vld [vmem:[%s3243_s7 + $0x8] sm:$0xff]  ;;  %v515_v42 = vld [vmem:[%s3244_s8 + $0x18] sm:$0xff]  ;;  %v496_v43 = vld [vmem:[%s3243_s7] sm:$0xff] }
  0x32   : > { %853 = vperm.xlu1 %2384, %v847_v47   ;;  %2111 = vmatpush3.msra.mxu0 %v451_v48  ;;  %v514_v45 = vld [vmem:[%s3244_s8 + $0x10] sm:$0xff]  ;;  %v513_v47 = vld [vmem:[%s3244_s8 + $0x8] sm:$0xff]  ;;  %v512_v48 = vld [vmem:[%s3244_s8] sm:$0xff] }
  0x33   : > { %1969 = vmatprep.subr.mxu1 %v485_v49  ;;  %2112 = vmatprep.subr.mxu0 %v2448_v4 }
  0x34   : > { %856 = vperm.xlu0 %2383, %v848_v50   ;;  %1970 = vmatpush3.msra.mxu1 %v469_v51 }
  0x35   : > { %2113 = vmatpush3.msra.mxu0 %v450_v52  ;;  %1971 = vmatprep.subr.mxu1 %v484_v53  ;;  %v1875_v52 = vld [vmem:[%s3245_s9 + $0x78] sm:$0xff]  ;;  %v1874_v53 = vld [vmem:[%s3245_s9 + $0x70] sm:$0xff] }
  0x36   : > { %2114 = vmatprep.subr.mxu0 %v2448_v4  ;;  %1972 = vmatpush3.msra.mxu1 %v468_v54  ;;  %v1873_v54 = vld [vmem:[%s3245_s9 + $0x68] sm:$0xff] }
  0x37   : > { %2115 = vmatpush3.msra.mxu0 %v449_v55  ;;  %1973 = vmatprep.subr.mxu1 %v483_v56  ;;  %v1872_v55 = vld [vmem:[%s3245_s9 + $0x60] sm:$0xff]  ;;  %v1881_v56 = vld [vmem:[%s3245_s9 + $0x98] sm:$0xff] }
  0x38   : > { %2116 = vmatprep.subr.mxu0 %v2448_v4  ;;  %1974 = vmatpush3.msra.mxu1 %v467_v57  ;;  %v1871_v57 = vld [vmem:[%s3245_s9 + $0x58] sm:$0xff] }
  0x39   : > { %2117 = vmatpush3.msra.mxu0 %v448_v58  ;;  %1975 = vmatprep.subr.mxu1 %v482_v59  ;;  %v1880_v58 = vld [vmem:[%s3245_s9 + $0x90] sm:$0xff] }
  0x3a   : > { %2118 = vmatprep.mubr.msk.f32.mxu0 %vm2449_vm0, %v2448_v4  ;;  %1976 = vmatpush3.msra.mxu1 %v466_v60  ;;  %v1870_v59 = vld [vmem:[%s3245_s9 + $0x50] sm:$0xff]  ;;  %v1879_v60 = vld [vmem:[%s3245_s9 + $0x88] sm:$0xff] }
  0x3b   : > { %2127 = vmatprep.subr.mxu0 %v2448_v4  ;;  %1977 = vmatprep.subr.mxu1 %v481_v61  ;;  %v1869_v61 = vld [vmem:[%s3245_s9 + $0x48] sm:$0xff] }
  0x3c   : > { %1978 = vmatpush3.msra.mxu1 %v465_v62  ;;  %v1878_v62 = vld [vmem:[%s3245_s9 + $0x80] sm:$0xff] }
  0x3d   : > { %1979 = vmatprep.subr.mxu1 %v480_v63  ;;  %v1868_v63 = vld [vmem:[%s3245_s9 + $0x40] sm:$0xff] }
  0x3e   : > { %1980 = vmatpush3.msra.mxu1 %v464_v0 }
  0x3f   : > { %2168 = vmatprep.subr.mxu1 %v2448_v4 }
  0x97   : > { %v636_v3 = vpop.permute.xlu0 %635 }
  0x98   : > { %vm640_vm2 = vcmp.eq.s32.totalorder %v2760_v2, %v636_v3  ;;  %vm641_vm6 = vcmp.eq.s32.totalorder %v631_v7, %v636_v3 }
  0x99   : > { %v535_v5 = vpop.permute.xlu1 %534 }
  0x9a   : > { %vm542_vm1 = vcmp.eq.s32.totalorder %v2760_v2, %v535_v5 }
  0x9b   : > { %2119 = vmatmul.mubr.msk.f32.vlgmr.msra.gmra.mxu0 %vm542_vm1, %v2450_v8  ;;  %v650_v9 = vpop.permute.xlu0 %649 }
  0x9c   : > { %2128 = vmatpush3.msra.mxu0 %v511_v6  ;;  %vm654_vm3 = vcmp.eq.s32.totalorder %v2760_v2, %v650_v9  ;;  %2121 = vmatprep.mubr.msk.f32.mxu0 %vm2449_vm0, %v2448_v4  ;;  %vm655_vm4 = vcmp.eq.s32.totalorder %v631_v7, %v650_v9 }
  0x9d   : > { %vm2775_vm5 = vmor %vm640_vm2, %vm654_vm3  ;;  %2129 = vmatprep.subr.mxu0 %v2448_v4  ;;  %v538_v12 = vpop.permute.xlu1 %537 }
  0x9e   : > { %2130 = vmatpush3.msra.mxu0 %v510_v10  ;;  %vm543_vm7 = vcmp.eq.s32.totalorder %v2760_v2, %v538_v12  ;;  %vm659_vm8 = vmor %vm641_vm6, %vm655_vm4 }
  0x9f   : > { %2131 = vmatprep.subr.mxu0 %v2448_v4  ;;  %2122 = vmatmul.mubr.msk.f32.gmra.mxu0 %vm543_vm7, %v2450_v8  ;;  %v639_v15 = vpop.permute.xlu0 %638  ;;  %vm1048_vm7 = vcmask 261120  }
  0xa0   : > { %1852 = vmatprep.mubr.msk.f32.mxu1 %vm659_vm8, %v2450_v8  ;;  %2132 = vmatpush3.msra.mxu0 %v509_v13  ;;  %vm642_vm9 = vcmp.eq.s32.totalorder %v2760_v2, %v639_v15  ;;  %vm643_vm10 = vcmp.eq.s32.totalorder %v631_v7, %v639_v15  ;;  %vm974_vm8 = vcmask 523264  }
  0xa1   : > { %1853 = vmatmul.mubr.msk.f32.vlgmr.msra.gmra.mxu1 %vm2775_vm5, %v2450_v8  ;;  %2133 = vmatprep.subr.mxu0 %v2448_v4  ;;  %v653_v17 = vpop.permute.xlu1 %652 }
  0xa2   : > { %2169 = vmatpush3.msra.mxu1 %v527_v14  ;;  %2134 = vmatpush3.msra.mxu0 %v508_v16  ;;  %vm656_vm11 = vcmp.eq.s32.totalorder %v2760_v2, %v653_v17  ;;  %vm657_vm12 = vcmp.eq.s32.totalorder %v631_v7, %v653_v17 }
  0xa3   : > { %2170 = vmatprep.subr.mxu1 %v2448_v4  ;;  %vm660_vm13 = vmor %vm642_vm9, %vm656_vm11  ;;  %2135 = vmatprep.subr.mxu0 %v2448_v4  ;;  %v541_v21 = vpop.permute.xlu0 %540  ;;  %vm1695_vm9 = vcmp.eq.s32.totalorder %v2760_v2, 3  ;;  %vm1698_vm11 = vcmp.le.s32.totalorder %v2760_v2, 9 }
  0xa4   : > { %vm661_vm14 = vmor %vm643_vm10, %vm657_vm12  ;;  %2171 = vmatpush3.msra.mxu1 %v526_v18  ;;  %2136 = vmatpush3.msra.mxu0 %v507_v19  ;;  %vm544_vm15 = vcmp.eq.s32.totalorder %v2760_v2, %v541_v21  ;;  %vm1697_vm10 = vcmp.ge.s32.totalorder %v2760_v2, 7 }
  0xa5   : > { %2172 = vmatprep.subr.mxu1 %v2448_v4  ;;  %1854 = vmatprep.mubr.msk.f32.mxu1 %vm661_vm14, %v2450_v8  ;;  %v750_v39 = vpop.permute.xlu1 %749 }
  0xa6   : > { %2173 = vmatpush3.msra.mxu1 %v525_v20  ;;  %2137 = vmatprep.subr.mxu0 %v2448_v4  ;;  %vm757_vm1 = vcmp.eq.s32.totalorder %v2760_v2, %v750_v39  ;;  %v1892_v39 = vld [vmem:[%s3245_s9 + $0x100] sm:$0xff] }
  0xa7   : > { %2124 = vmatprep.mubr.msk.f32.mxu0 %vm2449_vm0, %v2448_v4  ;;  %1855 = vmatmul.mubr.msk.f32.gmra.mxu1 %vm660_vm13, %v2450_v8  ;;  %v851_v44 = vpop.permute.xlu0 %850  ;;  %vm1699_vm13 = vmand %vm1697_vm10, %vm1698_vm11 }
  0xa8   : > { %2138 = vmatpush3.msra.mxu0 %v506_v22  ;;  %2174 = vmatprep.subr.mxu1 %v2448_v4  ;;  %vm858_vm3 = vcmp.eq.s32.totalorder %v2760_v2, %v851_v44 }
  0xa9   : > { %2125 = vmatmul.mubr.msk.f32.gmra.mxu0 %vm544_vm15, %v2450_v8  ;;  %2139 = vmatprep.subr.mxu0 %v2448_v4  ;;  %v753_v46 = vpop.permute.xlu1 %752  ;;  %vm1705_vm15 = vcmp.eq.s32.totalorder %v2760_v2, 4 }
  0xaa   : > { %2175 = vmatpush3.msra.mxu1 %v524_v23  ;;  %2140 = vmatpush3.msra.mxu0 %v505_v24  ;;  %vm758_vm2 = vcmp.eq.s32.totalorder %v2760_v2, %v753_v46  ;;  %v1899_v46 = vld [vmem:[%s3245_s9 + $0x150] sm:$0xff] }
  0xab   : > { %2176 = vmatprep.subr.mxu1 %v2448_v4  ;;  %2141 = vmatprep.subr.mxu0 %v2448_v4  ;;  %v756_v49 = vpop.permute.xlu0 %755 }
  0xac   : > { %2177 = vmatpush3.msra.mxu1 %v523_v25  ;;  %2142 = vmatpush3.msra.mxu0 %v504_v26  ;;  %vm759_vm4 = vcmp.eq.s32.totalorder %v2760_v2, %v756_v49  ;;  %v1895_v26 = vld [vmem:[%s3245_s9 + $0x118] sm:$0xff] }
  0xad   : > { %2178 = vmatprep.subr.mxu1 %v2448_v4  ;;  %2143 = vmatprep.subr.mxu0 %v2448_v4  ;;  %v854_v50 = vpop.permute.xlu1 %853 }
  0xae   : > { %2179 = vmatpush3.msra.mxu1 %v522_v27  ;;  %2144 = vmatpush3.msra.mxu0 %v503_v28  ;;  %vm859_vm5 = vcmp.eq.s32.totalorder %v2760_v2, %v854_v50  ;;  %v1888_v50 = vld [vmem:[%s3245_s9 + $0xe8] sm:$0xff] }
  0xaf   : > { %2180 = vmatprep.subr.mxu1 %v2448_v4  ;;  %2145 = vmatprep.subr.mxu0 %v2448_v4  ;;  %v857_v51 = vpop.permute.xlu0 %856 }
  0xb0   : > { %2181 = vmatpush3.msra.mxu1 %v521_v29  ;;  %2146 = vmatpush3.msra.mxu0 %v502_v30  ;;  %vm860_vm6 = vcmp.eq.s32.totalorder %v2760_v2, %v857_v51  ;;  %v963_v29 = vld [vmem:[%s3245_s9 + $0x18] sm:$0xff]  ;;  %v1897_v51 = vld [vmem:[%s3245_s9 + $0x140] sm:$0xff] }
  0xb1   : > { %2182 = vmatprep.subr.mxu1 %v2448_v4  ;;  %2147 = vmatprep.subr.mxu0 %v2448_v4 }
  0xb2   : > { %2183 = vmatpush3.msra.mxu1 %v520_v31  ;;  %2148 = vmatpush3.msra.mxu0 %v501_v32  ;;  %v1894_v32 = vld [vmem:[%s3245_s9 + $0x110] sm:$0xff] }
  0xb3   : > { %2184 = vmatprep.subr.mxu1 %v2448_v4  ;;  %2149 = vmatprep.subr.mxu0 %v2448_v4 }
  0xb4   : > { %2185 = vmatpush3.msra.mxu1 %v519_v33  ;;  %2150 = vmatpush3.msra.mxu0 %v500_v34  ;;  %v962_v33 = vld [vmem:[%s3245_s9 + $0x10] sm:$0xff] }
  0xb5   : > { %2186 = vmatprep.subr.mxu1 %v2448_v4  ;;  %2151 = vmatprep.subr.mxu0 %v2448_v4 }
  0xb6   : > { %2187 = vmatpush3.msra.mxu1 %v518_v35  ;;  %2152 = vmatpush3.msra.mxu0 %v499_v36  ;;  %v1893_v35 = vld [vmem:[%s3245_s9 + $0x108] sm:$0xff] }
  0xb7   : > { %2188 = vmatprep.subr.mxu1 %v2448_v4  ;;  %2153 = vmatprep.subr.mxu0 %v2448_v4  ;;  %v961_v36 = vld [vmem:[%s3245_s9 + $0x8] sm:$0xff] }
  0xb8   : > { %2189 = vmatpush3.msra.mxu1 %v517_v37  ;;  %2154 = vmatpush3.msra.mxu0 %v498_v38 }
  0xb9   : > { %2190 = vmatprep.subr.mxu1 %v2448_v4  ;;  %2155 = vmatprep.subr.mxu0 %v2448_v4 }
  0xba   : > { %2191 = vmatpush3.msra.mxu1 %v516_v40  ;;  %2156 = vmatpush3.msra.mxu0 %v497_v41  ;;  %v960_v40 = vld [vmem:[%s3245_s9] sm:$0xff] }
  0xbb   : > { %2192 = vmatprep.subr.mxu1 %v2448_v4  ;;  %2157 = vmatprep.subr.mxu0 %v2448_v4 }
  0xbc   : > { %2193 = vmatpush3.msra.mxu1 %v515_v42  ;;  %2158 = vmatpush3.msra.mxu0 %v496_v43  ;;  %v1900_v43 = vld [vmem:[%s3245_s9 + $0x158] sm:$0xff] }
  0xbd   : > { %2159 = vmatprep.mubr.msk.f32.mxu0 %vm2449_vm0, %v2448_v4  ;;  %2194 = vmatprep.subr.mxu1 %v2448_v4 }
  0xbe   : > { %2160 = vmatmul.mubr.msk.f32.vlgmr.msra.gmra.mxu0 %vm757_vm1, %v2450_v8  ;;  %2195 = vmatpush3.msra.mxu1 %v514_v45  ;;  %v1890_v45 = vld [vmem:[%s3245_s9 + $0xf8] sm:$0xff] }
  0xbf   : > { %2196 = vmatprep.subr.mxu1 %v2448_v4  ;;  %2162 = vmatprep.mubr.msk.f32.mxu0 %vm2449_vm0, %v2448_v4 }
  0xc0   : > { %2197 = vmatpush3.msra.mxu1 %v513_v47  ;;  %2200 = vmatprep.mubr.msk.f32.mxu1 %vm2449_vm0, %v2448_v4  ;;  %v1889_v47 = vld [vmem:[%s3245_s9 + $0xf0] sm:$0xff] }
  0xc1   : > { %2198 = vmatprep.subr.mxu1 %v2448_v4  ;;  %2209 = vmatprep.subr.mxu0 %v2448_v4 }
  0xc2   : > { %2163 = vmatmul.mubr.msk.f32.gmra.mxu0 %vm758_vm2, %v2450_v8  ;;  %2199 = vmatpush3.msra.mxu1 %v512_v48  ;;  %v1898_v48 = vld [vmem:[%s3245_s9 + $0x148] sm:$0xff] }
  0xc3   : > { %2201 = vmatmul.mubr.msk.f32.vlgmr.msra.gmra.mxu1 %vm858_vm3, %v2450_v8  ;;  %2165 = vmatprep.mubr.msk.f32.mxu0 %vm2449_vm0, %v2448_v4 }
  0xc4   : > { %2203 = vmatprep.mubr.msk.f32.mxu1 %vm2449_vm0, %v2448_v4  ;;  %2239 = vmatprep.subr.mxu1 %v2448_v4 }
  0xc5   : > { %2210 = vmatpush3.msra.mxu0 %v1875_v52  ;;  %2240 = vmatpush3.msra.mxu1 %v1881_v56  ;;  %v1887_v52 = vld [vmem:[%s3245_s9 + $0xe0] sm:$0xff] }
  0xc6   : > { %2166 = vmatmul.mubr.msk.f32.gmra.mxu0 %vm759_vm4, %v2450_v8  ;;  %2211 = vmatprep.subr.mxu0 %v2448_v4 }
  0xc7   : > { %2204 = vmatmul.mubr.msk.f32.gmra.mxu1 %vm859_vm5, %v2450_v8  ;;  %2225 = vmatprep.mubr.msk.f32.mxu0 %vm2449_vm0, %v2448_v4 }
  0xc8   : > { %2206 = vmatprep.mubr.msk.f32.mxu1 %vm2449_vm0, %v2448_v4  ;;  %2212 = vmatpush3.msra.mxu0 %v1874_v53 }
  0xc9   : > { %2213 = vmatprep.subr.mxu0 %v2448_v4  ;;  %2241 = vmatprep.subr.mxu1 %v2448_v4 }
  0xca   : > { %2214 = vmatpush3.msra.mxu0 %v1873_v54  ;;  %2242 = vmatpush3.msra.mxu1 %v1880_v58  ;;  %v1914_v54 = vld [vmem:[%s3245_s9 + $0x1d8] sm:$0xff]  ;;  %v1885_v58 = vld [vmem:[%s3245_s9 + $0xd0] sm:$0xff] }
  0xcb   : > { %2207 = vmatmul.mubr.msk.f32.gmra.mxu1 %vm860_vm6, %v2450_v8  ;;  %2215 = vmatprep.subr.mxu0 %v2448_v4 }
  0xcc   : > { %2247 = vmatprep.mubr.msk.f32.mxu1 %vm2449_vm0, %v2448_v4  ;;  %2216 = vmatpush3.msra.mxu0 %v1872_v55  ;;  %v1886_v55 = vld [vmem:[%s3245_s9 + $0xd8] sm:$0xff] }
  0xcd   : > { %2217 = vmatprep.subr.mxu0 %v2448_v4  ;;  %2243 = vmatprep.subr.mxu1 %v2448_v4 }
  0xce   : > { %2218 = vmatpush3.msra.mxu0 %v1871_v57  ;;  %2244 = vmatpush3.msra.mxu1 %v1879_v60  ;;  %v1913_v57 = vld [vmem:[%s3245_s9 + $0x1d0] sm:$0xff]  ;;  %v1912_v60 = vld [vmem:[%s3245_s9 + $0x1c8] sm:$0xff] }
  0xcf   : > { %2219 = vmatprep.subr.mxu0 %v2448_v4  ;;  %2245 = vmatprep.subr.mxu1 %v2448_v4 }
  0xd0   : > { %2220 = vmatpush3.msra.mxu0 %v1870_v59  ;;  %2246 = vmatpush3.msra.mxu1 %v1878_v62 }
  0xd1   : > { %2221 = vmatprep.subr.mxu0 %v2448_v4  ;;  %2269 = vmatprep.subr.mxu1 %v2448_v4 }
  0xd2   : > { %2222 = vmatpush3.msra.mxu0 %v1869_v61  ;;  %v1884_v61 = vld [vmem:[%s3245_s9 + $0xc8] sm:$0xff] }
  0xd3   : > { %2223 = vmatprep.subr.mxu0 %v2448_v4 }
  0xd4   : > { %2224 = vmatpush3.msra.mxu0 %v1868_v63  ;;  %v1911_v63 = vld [vmem:[%s3245_s9 + $0x1c0] sm:$0xff] }
  0xd5   : > { %2228 = vmatprep.subr.mxu0 %v2448_v4 }
 0x15b   : > { %v617_v0 = vpop.f32.mrf.mxu0 }
 0x15d   : > { %v2120_v1 = vpop.f32.mrf.mxu0 }
 0x15f   : > { %v622_v3 = vpop.f32.mrf.mxu0 }
 0x161   : > { %v2123_v5 = vpop.f32.mrf.mxu0  ;;  %v1981_v8 = vpop.f32.mrf.mxu1 }
 0x162   : > { %v1923_v5 = vld [vmem:[%s3245_s9 + $0x238] sm:$0xff] }
 0x163   : > { %v1982_v9 = vpop.f32.mrf.mxu1 }
 0x164   : > { %v1983_v17 = vadd.f32 %v1982_v9, %v1981_v8  ;;  %v1908_v8 = vld [vmem:[%s3245_s9 + $0x1b0] sm:$0xff]  ;;  %v1921_v9 = vld [vmem:[%s3245_s9 + $0x228] sm:$0xff] }
 0x167   : > { %v2991_v10 = vpop.f32.mrf.mxu1 }
 0x169   : > { %v627_v6 = vpop.f32.mrf.mxu0  ;;  %v2993_v13 = vpop.f32.mrf.mxu1 }
 0x16a   : > { %v1286_v41 = vmul.f32 %v627_v6, %v627_v6  ;;  %v1986_v59 = vadd.f32 %v2993_v13, %v2991_v10  ;;  %v1909_v6 = vld [vmem:[%s3245_s9 + $0x1b8] sm:$0xff]  ;;  %v1907_v10 = vld [vmem:[%s3245_s9 + $0x1a8] sm:$0xff] }
 0x16b   : > { %v2126_v7 = vpop.f32.mrf.mxu0  ;;  %v1919_v13 = vld [vmem:[%s3245_s9 + $0x218] sm:$0xff] }
 0x16c   : > { %v1922_v7 = vld [vmem:[%s3245_s9 + $0x230] sm:$0xff] }
 0x17e   : > { %v832_v11 = vpop.f32.mrf.mxu0 }
 0x17f   : > { %v947_v30 = vsub.f32 1.0, %v832_v11  ;;  %v1920_v11 = vld [vmem:[%s3245_s9 + $0x220] sm:$0xff] }
 0x180   : > { %v2161_v12 = vpop.f32.mrf.mxu0 }
 0x181   : > { %v948_v37 = vmul.f32 %v947_v30, %v617_v0  ;;  %v1883_v0 = vld [vmem:[%s3245_s9 + $0xc0] sm:$0xff] }
 0x182   : > { %v837_v14 = vpop.f32.mrf.mxu0  ;;  %v1906_v12 = vld [vmem:[%s3245_s9 + $0x1a0] sm:$0xff] }
 0x183   : > { %v951_v15 = vsub.f32 1.0, %v837_v14  ;;  %v933_v16 = vpop.f32.mrf.mxu1  ;;  %v959_v42 = vmul.f32 %v948_v37, %v948_v37  ;;  %v1905_v14 = vld [vmem:[%s3245_s9 + $0x198] sm:$0xff] }
 0x184   : > { %v949_v18 = vsub.f32 1.0, %v933_v16  ;;  %v2164_v19 = vpop.f32.mrf.mxu0  ;;  %v1918_v16 = vld [vmem:[%s3245_s9 + $0x210] sm:$0xff] }
 0x185   : > { %v952_v20 = vmul.f32 %v951_v15, %v622_v3  ;;  %v2202_v21 = vpop.f32.mrf.mxu1  ;;  %v1903_v19 = vld [vmem:[%s3245_s9 + $0x188] sm:$0xff] }
 0x186   : > { %v950_v22 = vmul.f32 %v1983_v17, %v949_v18  ;;  %v2995_v23 = vpop.f32.mrf.mxu0  ;;  %v1904_v17 = vld [vmem:[%s3245_s9 + $0x190] sm:$0xff]  ;;  %v1917_v18 = vld [vmem:[%s3245_s9 + $0x208] sm:$0xff]  ;;  %v1916_v21 = vld [vmem:[%s3245_s9 + $0x200] sm:$0xff] }
 0x187   : > { %v1122_v24 = vmul.f32 %v952_v20, %v952_v20  ;;  %v2997_v25 = vpop.f32.mrf.mxu1  ;;  %v955_v44 = vsub.f32 1.0, %v2995_v23  ;;  %v1530_v1 = vand.u32 2147483647, %v2995_v23 }
 0x188   : > { %v964_v27 = vmul.f32 %v950_v22, %v950_v22  ;;  %v2167_v28 = vpop.f32.mrf.mxu0  ;;  %v953_v56 = vsub.f32 1.0, %v2997_v25  ;;  %v1902_v22 = vld [vmem:[%s3245_s9 + $0x180] sm:$0xff] }
 0x189   : > { %v2205_v31 = vpop.f32.mrf.mxu1  ;;  %2248 = vmatmul.mubr.msk.f32.vlgmr.msra.gmra.mxu1 %vm1048_vm7, %v1122_v24  ;;  %v956_v49 = vmul.f32 %v955_v44, %v2995_v23 }
 0x18a   : > { %2270 = vmatpush3.msra.mxu1 %v1895_v26  ;;  %2226 = vmatmul.mubr.msk.f32.vlgmr.msra.gmra.mxu0 %vm974_vm8, %v964_v27  ;;  %v954_v62 = vmul.f32 %v1986_v59, %v953_v56 }
 0x18b   : > { %2229 = vmatpush3.msra.mxu0 %v963_v29  ;;  %2271 = vmatprep.subr.mxu1 %v2448_v4  ;;  %v3014_v34 = vpop.f32.mrf.mxu1  ;;  %v1366_v53 = vmul.f32 %v956_v49, %v956_v49 }
 0x18c   : > { %2230 = vmatprep.subr.mxu0 %v2448_v4  ;;  %2272 = vmatpush3.msra.mxu1 %v1894_v32  ;;  %v1202_v3 = vmul.f32 %v954_v62, %v954_v62  ;;  %v957_v15 = vsub.f32 1.0, %v3014_v34  ;;  %v1610_v23 = vand.u32 2147483647, %v3014_v34 }
 0x18d   : > { %2231 = vmatpush3.msra.mxu0 %v962_v33  ;;  %2273 = vmatprep.subr.mxu1 %v2448_v4  ;;  %v2208_v38 = vpop.f32.mrf.mxu1 }
 0x18e   : > { %2232 = vmatprep.subr.mxu0 %v2448_v4  ;;  %2274 = vmatpush3.msra.mxu1 %v1893_v35  ;;  %v958_v20 = vmul.f32 %v957_v15, %v3014_v34 }
 0x18f   : > { %2233 = vmatpush3.msra.mxu0 %v961_v36  ;;  %2275 = vmatprep.subr.mxu1 %v2448_v4 }
 0x190   : > { %2234 = vmatprep.subr.mxu0 %v2448_v4  ;;  %2276 = vmatpush3.msra.mxu1 %v1892_v39  ;;  %v1446_v24 = vmul.f32 %v958_v20, %v958_v20 }
 0x191   : > { %2277 = vmatprep.mubr.msk.f32.mxu1 %vm2449_vm0, %v2448_v4  ;;  %2235 = vmatpush3.msra.mxu0 %v960_v40 }
 0x192   : > { %2236 = vmatprep.mubr.msk.f32.mxu0 %vm2449_vm0, %v2448_v4  ;;  %2278 = vmatmul.mubr.msk.f32.vlgmr.msra.gmra.mxu1 %vm1048_vm7, %v1286_v41 }
 0x193   : > { %2280 = vmatprep.subr.mxu1 %v2448_v4  ;;  %2237 = vmatmul.mubr.msk.f32.vlgmr.msra.gmra.mxu0 %vm1048_vm7, %v959_v42 }
 0x194   : > { %2250 = vmatprep.subr.mxu0 %v2448_v4  ;;  %2281 = vmatpush3.msra.mxu1 %v1900_v43 }
 0x195   : > { %2251 = vmatpush3.msra.mxu0 %v1890_v45  ;;  %2282 = vmatprep.subr.mxu1 %v2448_v4 }
 0x196   : > { %2252 = vmatprep.subr.mxu0 %v2448_v4  ;;  %2283 = vmatpush3.msra.mxu1 %v1899_v46 }
 0x197   : > { %2253 = vmatpush3.msra.mxu0 %v1889_v47  ;;  %2284 = vmatprep.subr.mxu1 %v2448_v4 }
 0x198   : > { %2254 = vmatprep.subr.mxu0 %v2448_v4  ;;  %2285 = vmatpush3.msra.mxu1 %v1898_v48 }
 0x199   : > { %2255 = vmatpush3.msra.mxu0 %v1888_v50  ;;  %2286 = vmatprep.subr.mxu1 %v2448_v4 }
 0x19a   : > { %2256 = vmatprep.subr.mxu0 %v2448_v4  ;;  %2287 = vmatpush3.msra.mxu1 %v1897_v51 }
 0x19b   : > { %2288 = vmatprep.mubr.msk.f32.mxu1 %vm2449_vm0, %v2448_v4  ;;  %2257 = vmatpush3.msra.mxu0 %v1887_v52 }
 0x19c   : > { %2289 = vmatmul.mubr.msk.f32.vlgmr.msra.gmra.mxu1 %vm1048_vm7, %v1366_v53  ;;  %2310 = vmatprep.subr.mxu1 %v2448_v4 }
 0x19d   : > { %2258 = vmatprep.subr.mxu0 %v2448_v4  ;;  %2311 = vmatpush3.msra.mxu1 %v1914_v54 }
 0x19e   : > { %2259 = vmatpush3.msra.mxu0 %v1886_v55  ;;  %2312 = vmatprep.subr.mxu1 %v2448_v4 }
 0x19f   : > { %2260 = vmatprep.subr.mxu0 %v2448_v4  ;;  %2313 = vmatpush3.msra.mxu1 %v1913_v57 }
 0x1a0   : > { %2261 = vmatpush3.msra.mxu0 %v1885_v58  ;;  %2314 = vmatprep.subr.mxu1 %v2448_v4 }
 0x1a1   : > { %2262 = vmatprep.subr.mxu0 %v2448_v4  ;;  %2315 = vmatpush3.msra.mxu1 %v1912_v60 }
 0x1a2   : > { %2263 = vmatpush3.msra.mxu0 %v1884_v61  ;;  %2316 = vmatprep.subr.mxu1 %v2448_v4 }
 0x1a3   : > { %2264 = vmatprep.subr.mxu0 %v2448_v4  ;;  %2317 = vmatpush3.msra.mxu1 %v1911_v63 }
 0x1a4   : > { %2318 = vmatprep.mubr.msk.f32.mxu1 %vm2449_vm0, %v2448_v4  ;;  %2265 = vmatpush3.msra.mxu0 %v1883_v0 }
 0x1a5   : > { %2266 = vmatprep.mubr.msk.f32.mxu0 %vm2449_vm0, %v2448_v4  ;;  %2319 = vmatmul.mubr.msk.f32.vlgmr.msra.gmra.mxu1 %vm1048_vm7, %v1530_v1 }
 0x1a6   : > { %2321 = vmatprep.subr.mxu1 %v2448_v4  ;;  %2267 = vmatmul.mubr.msk.f32.vlgmr.msra.gmra.mxu0 %vm974_vm8, %v1202_v3 }
 0x1a7   : > { %2291 = vmatprep.subr.mxu0 %v2448_v4  ;;  %2322 = vmatpush3.msra.mxu1 %v1923_v5 }
 0x1a8   : > { %2292 = vmatpush3.msra.mxu0 %v1909_v6  ;;  %2323 = vmatprep.subr.mxu1 %v2448_v4 }
 0x1a9   : > { %2293 = vmatprep.subr.mxu0 %v2448_v4  ;;  %2324 = vmatpush3.msra.mxu1 %v1922_v7 }
 0x1aa   : > { %2294 = vmatpush3.msra.mxu0 %v1908_v8  ;;  %2325 = vmatprep.subr.mxu1 %v2448_v4 }
 0x1ab   : > { %2295 = vmatprep.subr.mxu0 %v2448_v4  ;;  %2326 = vmatpush3.msra.mxu1 %v1921_v9 }
 0x1ac   : > { %2296 = vmatpush3.msra.mxu0 %v1907_v10  ;;  %2327 = vmatprep.subr.mxu1 %v2448_v4 }
 0x1ad   : > { %2297 = vmatprep.subr.mxu0 %v2448_v4  ;;  %2328 = vmatpush3.msra.mxu1 %v1920_v11 }
 0x1ae   : > { %2298 = vmatpush3.msra.mxu0 %v1906_v12  ;;  %2329 = vmatprep.subr.mxu1 %v2448_v4 }
 0x1af   : > { %2299 = vmatprep.subr.mxu0 %v2448_v4  ;;  %2330 = vmatpush3.msra.mxu1 %v1919_v13 }
 0x1b0   : > { %2300 = vmatpush3.msra.mxu0 %v1905_v14  ;;  %2331 = vmatprep.subr.mxu1 %v2448_v4 }
 0x1b1   : > { %2301 = vmatprep.subr.mxu0 %v2448_v4  ;;  %2332 = vmatpush3.msra.mxu1 %v1918_v16 }
 0x1b2   : > { %2302 = vmatpush3.msra.mxu0 %v1904_v17  ;;  %2333 = vmatprep.subr.mxu1 %v2448_v4 }
 0x1b3   : > { %2303 = vmatprep.subr.mxu0 %v2448_v4  ;;  %2334 = vmatpush3.msra.mxu1 %v1917_v18 }
 0x1b4   : > { %2304 = vmatpush3.msra.mxu0 %v1903_v19  ;;  %2335 = vmatprep.subr.mxu1 %v2448_v4 }
 0x1b5   : > { %2305 = vmatprep.subr.mxu0 %v2448_v4  ;;  %2336 = vmatpush3.msra.mxu1 %v1916_v21 }
 0x1b6   : > { %2337 = vmatprep.mubr.msk.f32.mxu1 %vm2449_vm0, %v2448_v4  ;;  %2306 = vmatpush3.msra.mxu0 %v1902_v22 }
 0x1b7   : > { %2307 = vmatprep.mubr.msk.f32.mxu0 %vm2449_vm0, %v2448_v4  ;;  %2338 = vmatmul.mubr.msk.f32.vlgmr.msra.gmra.mxu1 %vm974_vm8, %v1610_v23  ;;  %vm1694_vm0 = vcmp.eq.s32.totalorder %v2760_v2, 2 }
 0x1b8   : > { %2308 = vmatmul.mubr.msk.f32.vlgmr.msra.gmra.mxu0 %vm974_vm8, %v1446_v24  ;;  %vm1696_vm12 = vmor %vm1694_vm0, %vm1695_vm9 }
 0x1b9   : > { %vm1700_vm14 = vmor %vm1696_vm12, %vm1699_vm13 }
 0x249   : > { %v1197_v25 = vpop.f32.mrf.mxu1 }
 0x24a   : > { %v1044_v26 = vpop.f32.mrf.mxu0 }
 0x24b   : > { %v2249_v27 = vpop.f32.mrf.mxu1 }
 0x24c   : > { %v2227_v28 = vpop.f32.mrf.mxu0 }
 0x252   : > { %v1361_v29 = vpop.f32.mrf.mxu1 }
 0x253   : > { %v1118_v30 = vpop.f32.mrf.mxu0 }
 0x254   : > { %v2279_v31 = vpop.f32.mrf.mxu1  ;;  %v1119_v4 = vadd.f32 %v1118_v30, %v1044_v26 }
 0x255   : > { %v2238_v32 = vpop.f32.mrf.mxu0 }
 0x256   : > { %v1201_v39 = vadd.f32 %v1197_v25, %v1119_v4 }
 0x25c   : > { %v1441_v33 = vpop.f32.mrf.mxu1 }
 0x25e   : > { %v2290_v34 = vpop.f32.mrf.mxu1 }
 0x265   : > { %v1605_v35 = vpop.f32.mrf.mxu1 }
 0x266   : > { %v1281_v36 = vpop.f32.mrf.mxu0 }
 0x267   : > { %v2320_v37 = vpop.f32.mrf.mxu1  ;;  %v1285_v40 = vadd.f32 %v1281_v36, %v1201_v39 }
 0x268   : > { %v2268_v38 = vpop.f32.mrf.mxu0 }
 0x269   : > { %v1365_v41 = vadd.f32 %v1361_v29, %v1285_v40 }
 0x26b   : > { %v1445_v43 = vadd.f32 %v1441_v33, %v1365_v41 }
 0x277   : > { %v1689_v42 = vpop.f32.mrf.mxu1 }
 0x278   : > { %v1525_v44 = vpop.f32.mrf.mxu0 }
 0x279   : > { %v1529_v45 = vadd.f32 %v1525_v44, %v1445_v43  ;;  %v2339_v46 = vpop.f32.mrf.mxu1 }
 0x27a   : > { %v2309_v47 = vpop.f32.mrf.mxu0 }
 0x27b   : > { %v1609_v48 = vadd.f32 %v1605_v35, %v1529_v45 }
 0x27d   : > { %v1693_v49 = vadd.f32 %v1689_v42, %v1609_v48 }
 0x27f   : > { %v1701_v50 = vsub.f32 1.0, %v1693_v49  ;;  %v1925_v51 = vadd.f32 -1.0, %v1693_v49 }
 0x281   : > { %v1702_v52 = vmax.f32 %v1701_v50, 0.0  ;;  %v1706_v53 = vmul.f32 %v1925_v51, %v1925_v51 }
 0x283   : > { %v1703_v54 = vsel %vm1700_vm14, %v1702_v52, %v1693_v49 }
 0x284   : > { %v1707_v55 = vsel %vm1705_vm15, %v1706_v53, %v1703_v54 }
 0x285   : > { %1708 = vst [vmem:[%s417_s21] sm:$0xff] %v1707_v55 }
 0x286   : > { %2398 = shalt.err (!%p2395_p4)
}
 0x287   : > { %s2399_s27 = scalar_lea.hbm %s3201_s12, 128  ;;  %s2403_s11 = scalar_lea.hbm %s3246_s10, 256 }
 0x288   : > { %p2400_p7 = scmp.ne.s32.totalorder %s3201_s12, %s2399_s27  ;;  %p2404_p10 = scmp.lt.s32.totalorder %s3201_s12, %s3246_s10 }
 0x289   : > { %p2405_p11 = scmp.lt.s32.totalorder %s2403_s11, %s2399_s27 }
 0x28a   : > { %p2401_p8 = pnand %p2400_p7, %p2545_p5 }
 0x28b   : > { %p2406_p12 = por %p2405_p11, %p2404_p10 }
 0x28c   : > { %p2402_p9 = pneg %p2401_p8 }
 0x28e   : > { %p2407_p13 = pnand %p2406_p12, %p2402_p9 }
 0x290   : > { %2410 = shalt.err (!%p2407_p13)
}
 0x291   : > { %2340 = dma.vmem_to_hbm [thread:$0]  (%p2545_p5), %s1724_s26, 128, %s3201_s12, %s1710_s18  }
 0x292 PF: > { %p2346_p0 = scmp.ge.s32.totalorder %s2445_s16, 2  ;;  %s1735_s15 = sand.u32 1, %s2433_s13  }
 0x293   : > { %s1736_s25 = scalar_lea.sflag [#allocation3], %s1735_s15 }
 0x294   : > { %p2343_p1 = pnand %p2346_p0, %p2549_p6 }
 0x296   : > { %p2344_p2 = pneg %p2343_p1 }
 0x298   : > { %2428 = dma.done.wait (%p2344_p2), %s1736_s25, 128  }
 0x299   : > { %2430 = vsyncadd (%p2344_p2), %s1736_s25, 4294967168  ;;  %s3254_s17 = sld [smem:[#allocation5_spill]]  ;;  %p20_p3 = scmp.ge.s32.totalorder %s2532_s19, 4  }
 0x29a   : > { %s3255_s15 = sld [smem:[#allocation6_spill]]  ;;  %s3256_s13 = smov %s2437_s14 }
 0x29b   : > { %s3258_s16 = smov %s2532_s19  ;;  %22 = sbr.rel (!%p20_p3) target bundleno = 3 (0x3), region = 115 }
 0x29f   : > { %s3257_s14 = smov %s3254_s17 }
 0x2a0   :  { %1741 = vsyncpa [#allocation3], 1 }
 0x2a1   :  { %1743 = vsyncpa [#allocation3 + $0x1], 1 }

</bundles_post_ra>
